<compile_context>
chip_gen: v7x
topology: tpu7x:2x2x1
jax: 0.10.0
libtpu: 0.0.40
codegen_flags: <defaults>
</compile_context>

<pallas_src>
import math

import jax
import jax.numpy as jnp
from jax.experimental import pallas as pl
from jax.experimental.pallas import tpu as pltpu

# ---------------- model hyper-parameters (small, consistent with N x L x C) ----
N = 2            # batch
L = 8            # sequence length
C = 32           # d_model
H = 4            # attention heads
DH = C // H      # head dim
FF = 64          # feed-forward hidden
NUM_LAYERS = 2
EPS = 1e-5
NL = N * L       # fused batch*seq rows processed as one slab


def _layernorm(x, gamma, beta):
    # x: (rows, C) f32 ; gamma/beta: (1, C)
    mu = jnp.mean(x, axis=-1, keepdims=True)
    var = jnp.mean((x - mu) ** 2, axis=-1, keepdims=True)
    inv = jax.lax.rsqrt(var + EPS)          # EUP rsqrt
    return (x - mu) * inv * gamma + beta


def _split_heads(qkv, off):
    # (NL, 3C) slab -> (N*H, L, DH) for the projection starting at lane `off`.
    # Only static lane slices, sublane-only reshapes and a leading-dim stack
    # (all cheap / well supported Mosaic lowerings; no lane-splitting reshape).
    heads = [qkv[:, off + h * DH: off + (h + 1) * DH].reshape(N, L, DH)
             for h in range(H)]
    return jnp.stack(heads, axis=1).reshape(N * H, L, DH)


def _merge_heads(ctx):
    # (N*H, L, DH) -> (NL, C); head h occupies lanes [h*DH, (h+1)*DH)
    ctx = ctx.reshape(N, H, L, DH)
    return jnp.concatenate([ctx[:, h].reshape(NL, DH) for h in range(H)], axis=-1)


def encoder_kernel(x_ref,
                   wqkv_ref, bqkv_ref, wo_ref, bo_ref,
                   ln1g_ref, ln1b_ref,
                   w1_ref, b1_ref, w2_ref, b2_ref,
                   ln2g_ref, ln2b_ref,
                   ng_ref, nb_ref,
                   emb_ref,
                   act_ref):
    layer = pl.program_id(0)

    # Load x into the carried activation once, at the first layer.
    @pl.when(layer == 0)
    def _():
        act_ref[...] = x_ref[...].astype(jnp.float32)

    x = act_ref[...]                                         # (NL, C) f32

    # ---- fused QKV projection ----------------------------------------------
    qkv = jnp.dot(x, wqkv_ref[0], preferred_element_type=jnp.float32) + bqkv_ref[0]
    q = _split_heads(qkv, 0)                                 # (N*H, L, DH)
    k = _split_heads(qkv, C)
    v = _split_heads(qkv, 2 * C)

    # ---- head-batched attention (batch dim = N*H) ----------------------------
    scale = 1.0 / math.sqrt(DH)
    s = jnp.einsum('bqd,bkd->bqk', q, k,
                   preferred_element_type=jnp.float32) * scale   # (N*H, L, L)
    s = s - jnp.max(s, axis=-1, keepdims=True)
    p = jnp.exp(s)                                               # EUP exp
    p = p * pl.reciprocal(jnp.sum(p, axis=-1, keepdims=True), approx=True)
    ctx = jnp.einsum('bqk,bkd->bqd', p, v,
                     preferred_element_type=jnp.float32)         # (N*H, L, DH)
    ctx = _merge_heads(ctx)                                      # (NL, C)

    attn = jnp.dot(ctx, wo_ref[0], preferred_element_type=jnp.float32) + bo_ref[0]

    # ---- residual + LayerNorm 1 ----------------------------------------------
    h1 = _layernorm(x + attn, ln1g_ref[0], ln1b_ref[0])

    # ---- feed-forward ---------------------------------------------------------
    ff = jnp.dot(h1, w1_ref[0], preferred_element_type=jnp.float32) + b1_ref[0]
    ff = jnp.maximum(ff, 0.0)                                    # ReLU
    ff = jnp.dot(ff, w2_ref[0], preferred_element_type=jnp.float32) + b2_ref[0]

    # ---- residual + LayerNorm 2 ----------------------------------------------
    h2 = _layernorm(h1 + ff, ln2g_ref[0], ln2b_ref[0])

    # ---- shared Encoder.norm (applied after every layer, fed to next layer) ---
    out = _layernorm(h2, ng_ref[...], nb_ref[...])

    act_ref[...] = out                                           # carry to next layer
    emb_ref[0] = out.astype(emb_ref.dtype)                       # per-layer embedding


@jax.jit
def encoder_forward(x, stacked_layer_params, norm_params):
    """x: (N, L, C). Returns (x_final, embeds) with embeds: (NUM_LAYERS+1, N, L, C)."""
    (wqkv, bqkv, wo, bo, ln1g, ln1b, w1, b1, w2, b2, ln2g, ln2b) = stacked_layer_params
    ng, nb = norm_params

    x2 = x.reshape(NL, C)

    def full_spec(a):
        nd = a.ndim
        return pl.BlockSpec(a.shape, lambda l, _nd=nd: (0,) * _nd)

    def per_layer_spec(a):
        nd = a.ndim
        return pl.BlockSpec((1,) + a.shape[1:],
                            lambda l, _nd=nd: (l,) + (0,) * (_nd - 1))

    layer_args = [wqkv, bqkv, wo, bo, ln1g, ln1b, w1, b1, w2, b2, ln2g, ln2b]
    in_specs = ([full_spec(x2)]
                + [per_layer_spec(a) for a in layer_args]
                + [full_spec(ng), full_spec(nb)])

    flops = NUM_LAYERS * (2 * NL * C * (3 * C)            # fused QKV
                          + 2 * (N * H) * L * L * DH * 2  # scores + P@V
                          + 2 * NL * C * C                # output projection
                          + 2 * NL * C * FF               # FFN up
                          + 2 * NL * FF * C)              # FFN down
    transcendentals = NUM_LAYERS * (N * H * L * L + N * H * L + 3 * NL)
    bytes_accessed = 4 * (int(x2.size)
                          + sum(int(a.size) for a in layer_args)
                          + int(ng.size) + int(nb.size)
                          + NUM_LAYERS * NL * C)

    embeds_tail = pl.pallas_call(
        encoder_kernel,
        out_shape=jax.ShapeDtypeStruct((NUM_LAYERS, NL, C), x.dtype),
        grid_spec=pltpu.PrefetchScalarGridSpec(
            num_scalar_prefetch=0,
            grid=(NUM_LAYERS,),
            in_specs=in_specs,
            out_specs=pl.BlockSpec((1, NL, C), lambda l: (l, 0, 0)),
            scratch_shapes=[pltpu.VMEM((NL, C), jnp.float32)],
        ),
        compiler_params=pltpu.CompilerParams(
            dimension_semantics=("arbitrary",)),     # sequential layer carry
        cost_estimate=pl.CostEstimate(flops=flops,
                                      transcendentals=transcendentals,
                                      bytes_accessed=bytes_accessed),
    )(x2, *layer_args, ng, nb)

    embeds_tail = embeds_tail.reshape(NUM_LAYERS, N, L, C)
    embeds = jnp.concatenate([x[None], embeds_tail], axis=0)
    return embeds[-1], embeds


# ---------------- pure-JAX reference (for a loose numerical check) -------------
def _ref_forward(x, stacked_layer_params, norm_params):
    (wqkv, bqkv, wo, bo, ln1g, ln1b, w1, b1, w2, b2, ln2g, ln2b) = stacked_layer_params
    ng, nb = norm_params

    def ln(t, g, b):
        mu = jnp.mean(t, axis=-1, keepdims=True)
        var = jnp.mean((t - mu) ** 2, axis=-1, keepdims=True)
        return (t - mu) * jax.lax.rsqrt(var + EPS) * g + b

    embeds = [x]
    for li in range(NUM_LAYERS):
        qkv = x @ wqkv[li] + bqkv[li]                     # (N, L, 3C)
        q, k, v = jnp.split(qkv, 3, axis=-1)

        def heads(t):
            return t.reshape(N, L, H, DH).transpose(0, 2, 1, 3)   # (N, H, L, DH)

        qh, kh, vh = heads(q), heads(k), heads(v)
        s = jnp.einsum('nhqd,nhkd->nhqk', qh, kh) / math.sqrt(DH)
        p = jax.nn.softmax(s, axis=-1)
        ctx = jnp.einsum('nhqk,nhkd->nhqd', p, vh)
        ctx = ctx.transpose(0, 2, 1, 3).reshape(N, L, C)
        attn = ctx @ wo[li] + bo[li]
        h1 = ln(x + attn, ln1g[li], ln1b[li])
        ff = jnp.maximum(h1 @ w1[li] + b1[li], 0.0) @ w2[li] + b2[li]
        h2 = ln(h1 + ff, ln2g[li], ln2b[li])
        x = ln(h2, ng, nb)
        embeds.append(x)
    return x, jnp.stack(embeds, axis=0)


if __name__ == "__main__":
    root = jax.random.PRNGKey(0)
    keys = jax.random.split(root, 12)

    x = jax.random.normal(keys[0], (N, L, C), jnp.float32)

    def rnd(key, shape, scale):
        return jax.random.normal(key, shape, jnp.float32) * scale

    s_in = 1.0 / math.sqrt(C)
    wq = rnd(keys[1], (NUM_LAYERS, C, C), s_in)
    wk = rnd(keys[2], (NUM_LAYERS, C, C), s_in)
    wv = rnd(keys[3], (NUM_LAYERS, C, C), s_in)
    wqkv = jnp.concatenate([wq, wk, wv], axis=-1)          # (NUM_LAYERS, C, 3C)
    bqkv = rnd(keys[4], (NUM_LAYERS, 1, 3 * C), 0.02)
    wo = rnd(keys[5], (NUM_LAYERS, C, C), s_in)
    bo = rnd(keys[6], (NUM_LAYERS, 1, C), 0.02)
    w1 = rnd(keys[7], (NUM_LAYERS, C, FF), s_in)
    b1 = rnd(keys[8], (NUM_LAYERS, 1, FF), 0.02)
    w2 = rnd(keys[9], (NUM_LAYERS, FF, C), 1.0 / math.sqrt(FF))
    b2 = rnd(keys[10], (NUM_LAYERS, 1, C), 0.02)
    ln1g = jnp.ones((NUM_LAYERS, 1, C), jnp.float32)
    ln1b = jnp.zeros((NUM_LAYERS, 1, C), jnp.float32)
    ln2g = jnp.ones((NUM_LAYERS, 1, C), jnp.float32)
    ln2b = jnp.zeros((NUM_LAYERS, 1, C), jnp.float32)
    ng = jnp.ones((1, C), jnp.float32)
    nb = jnp.zeros((1, C), jnp.float32)

    stacked = (wqkv, bqkv, wo, bo, ln1g, ln1b, w1, b1, w2, b2, ln2g, ln2b)
    norm_params = (ng, nb)

    x_out, embeds = encoder_forward(x, stacked, norm_params)
    jax.block_until_ready((x_out, embeds))

    assert x_out.shape == (N, L, C)
    assert embeds.shape == (NUM_LAYERS + 1, N, L, C)

    # Loose tolerance: pl.reciprocal(approx=True) in the softmax differs slightly from f32.
    x_ref, embeds_ref = _ref_forward(x, stacked, norm_params)
    assert bool(jnp.all(jnp.isfinite(embeds)))
    assert bool(jnp.allclose(embeds, embeds_ref, atol=1e-2, rtol=1e-2))

    print("KERNEL_OK")
</pallas_src>

<mosaic_0001>
module attributes {stable_mosaic.version = 11 : i64} {
  func.func @encoder_kernel(%arg0: i32, %arg1: memref<16x32xf32, #tpu.memory_space<vmem>>, %arg2: memref<1x32x96xf32, #tpu.memory_space<vmem>>, %arg3: memref<1x1x96xf32, #tpu.memory_space<vmem>>, %arg4: memref<1x32x32xf32, #tpu.memory_space<vmem>>, %arg5: memref<1x1x32xf32, #tpu.memory_space<vmem>>, %arg6: memref<1x1x32xf32, #tpu.memory_space<vmem>>, %arg7: memref<1x1x32xf32, #tpu.memory_space<vmem>>, %arg8: memref<1x32x64xf32, #tpu.memory_space<vmem>>, %arg9: memref<1x1x64xf32, #tpu.memory_space<vmem>>, %arg10: memref<1x64x32xf32, #tpu.memory_space<vmem>>, %arg11: memref<1x1x32xf32, #tpu.memory_space<vmem>>, %arg12: memref<1x1x32xf32, #tpu.memory_space<vmem>>, %arg13: memref<1x1x32xf32, #tpu.memory_space<vmem>>, %arg14: memref<1x32xf32, #tpu.memory_space<vmem>>, %arg15: memref<1x32xf32, #tpu.memory_space<vmem>>, %arg16: memref<1x16x32xf32, #tpu.memory_space<vmem>>, %arg17: memref<16x32xf32, #tpu.memory_space<vmem>>) attributes {dimension_semantics = [#tpu.dimension_semantics<arbitrary>], iteration_bounds = array<i64: 2>, scalar_prefetch = 0 : i64, scratch_operands = 1 : i64, tpu.core_type = #tpu.core_type<tc>, window_params = [{pipeline_mode = #tpu.pipeline_mode<synchronous>, transform_indices = @transform_0, window_bounds = array<i64: 16, 32>}, {transform_indices = @transform_1, window_bounds = array<i64: 1, 32, 96>}, {transform_indices = @transform_2, window_bounds = array<i64: 1, 1, 96>}, {transform_indices = @transform_3, window_bounds = array<i64: 1, 32, 32>}, {transform_indices = @transform_4, window_bounds = array<i64: 1, 1, 32>}, {transform_indices = @transform_5, window_bounds = array<i64: 1, 1, 32>}, {transform_indices = @transform_6, window_bounds = array<i64: 1, 1, 32>}, {transform_indices = @transform_7, window_bounds = array<i64: 1, 32, 64>}, {transform_indices = @transform_8, window_bounds = array<i64: 1, 1, 64>}, {transform_indices = @transform_9, window_bounds = array<i64: 1, 64, 32>}, {transform_indices = @transform_10, window_bounds = array<i64: 1, 1, 32>}, {transform_indices = @transform_11, window_bounds = array<i64: 1, 1, 32>}, {transform_indices = @transform_12, window_bounds = array<i64: 1, 1, 32>}, {pipeline_mode = #tpu.pipeline_mode<synchronous>, transform_indices = @transform_13, window_bounds = array<i64: 1, 32>}, {pipeline_mode = #tpu.pipeline_mode<synchronous>, transform_indices = @transform_14, window_bounds = array<i64: 1, 32>}, {transform_indices = @transform_15, window_bounds = array<i64: 1, 16, 32>}]} {
    %c0_i32 = arith.constant 0 : i32
    %0 = arith.cmpi eq, %arg0, %c0_i32 : i32
    %1 = arith.extui %0 : i1 to i32
    %c0_i32_0 = arith.constant 0 : i32
    %2 = arith.cmpi ne, %1, %c0_i32_0 : i32
    scf.if %2 {
      %c0_71 = arith.constant 0 : index
      %c0_72 = arith.constant 0 : index
      %186 = vector.load %arg1[%c0_71, %c0_72] : memref<16x32xf32, #tpu.memory_space<vmem>>, vector<16x32xf32>
      %c0_73 = arith.constant 0 : index
      %c0_74 = arith.constant 0 : index
      %187 = vector.load %arg17[%c0_73, %c0_74] : memref<16x32xf32, #tpu.memory_space<vmem>>, vector<16x32xf32>
      tpu.vector_store %arg17[%c0_73, %c0_74], %186 {strides = array<i32>} : memref<16x32xf32, #tpu.memory_space<vmem>>, vector<16x32xf32>,
    } else {
    }
    %c0 = arith.constant 0 : index
    %c0_1 = arith.constant 0 : index
    %3 = vector.load %arg17[%c0, %c0_1] : memref<16x32xf32, #tpu.memory_space<vmem>>, vector<16x32xf32>
    %c0_2 = arith.constant 0 : index
    %c0_3 = arith.constant 0 : index
    %c0_4 = arith.constant 0 : index
    %4 = vector.load %arg2[%c0_2, %c0_3, %c0_4] : memref<1x32x96xf32, #tpu.memory_space<vmem>>, vector<1x32x96xf32>
    %5 = vector.shape_cast %4 : vector<1x32x96xf32> to vector<32x96xf32>
    %cst = arith.constant dense<0.000000e+00> : vector<16x96xf32>
    %6 = tpu.matmul %3, %5, %cst {dimension_numbers = #tpu.dot_dimension_numbers<[1], [0], [0], [1], [0, 0, 1, 1], [], []>} : vector<16x32xf32>, vector<32x96xf32>, vector<16x96xf32> -> vector<16x96xf32>
    %c0_5 = arith.constant 0 : index
    %c0_6 = arith.constant 0 : index
    %c0_7 = arith.constant 0 : index
    %7 = vector.load %arg3[%c0_5, %c0_6, %c0_7] : memref<1x1x96xf32, #tpu.memory_space<vmem>>, vector<1x1x96xf32>
    %8 = vector.shape_cast %7 : vector<1x1x96xf32> to vector<1x96xf32>
    %9 = vector.broadcast %8 : vector<1x96xf32> to vector<16x96xf32>
    %10 = arith.addf %6, %9 : vector<16x96xf32>
    %11 = vector.extract_strided_slice %10 {offsets = [0, 0], sizes = [16, 8], strides = [1, 1]} : vector<16x96xf32> to vector<16x8xf32>
    %12 = vector.shape_cast %11 : vector<16x8xf32> to vector<2x8x8xf32>
    %13 = vector.extract_strided_slice %10 {offsets = [0, 8], sizes = [16, 8], strides = [1, 1]} : vector<16x96xf32> to vector<16x8xf32>
    %14 = vector.shape_cast %13 : vector<16x8xf32> to vector<2x8x8xf32>
    %15 = vector.extract_strided_slice %10 {offsets = [0, 16], sizes = [16, 8], strides = [1, 1]} : vector<16x96xf32> to vector<16x8xf32>
    %16 = vector.shape_cast %15 : vector<16x8xf32> to vector<2x8x8xf32>
    %17 = vector.extract_strided_slice %10 {offsets = [0, 24], sizes = [16, 8], strides = [1, 1]} : vector<16x96xf32> to vector<16x8xf32>
    %18 = vector.shape_cast %17 : vector<16x8xf32> to vector<2x8x8xf32>
    %19 = vector.shape_cast %12 : vector<2x8x8xf32> to vector<2x1x8x8xf32>
    %20 = vector.shape_cast %14 : vector<2x8x8xf32> to vector<2x1x8x8xf32>
    %21 = vector.shape_cast %16 : vector<2x8x8xf32> to vector<2x1x8x8xf32>
    %22 = vector.shape_cast %18 : vector<2x8x8xf32> to vector<2x1x8x8xf32>
    %23 = tpu.concatenate %19, %20, %21, %22 in 1 : vector<2x1x8x8xf32>, vector<2x1x8x8xf32>, vector<2x1x8x8xf32>, vector<2x1x8x8xf32> -> vector<2x4x8x8xf32>
    %24 = vector.shape_cast %23 : vector<2x4x8x8xf32> to vector<8x8x8xf32>
    %25 = vector.extract_strided_slice %10 {offsets = [0, 32], sizes = [16, 8], strides = [1, 1]} : vector<16x96xf32> to vector<16x8xf32>
    %26 = vector.shape_cast %25 : vector<16x8xf32> to vector<2x8x8xf32>
    %27 = vector.extract_strided_slice %10 {offsets = [0, 40], sizes = [16, 8], strides = [1, 1]} : vector<16x96xf32> to vector<16x8xf32>
    %28 = vector.shape_cast %27 : vector<16x8xf32> to vector<2x8x8xf32>
    %29 = vector.extract_strided_slice %10 {offsets = [0, 48], sizes = [16, 8], strides = [1, 1]} : vector<16x96xf32> to vector<16x8xf32>
    %30 = vector.shape_cast %29 : vector<16x8xf32> to vector<2x8x8xf32>
    %31 = vector.extract_strided_slice %10 {offsets = [0, 56], sizes = [16, 8], strides = [1, 1]} : vector<16x96xf32> to vector<16x8xf32>
    %32 = vector.shape_cast %31 : vector<16x8xf32> to vector<2x8x8xf32>
    %33 = vector.shape_cast %26 : vector<2x8x8xf32> to vector<2x1x8x8xf32>
    %34 = vector.shape_cast %28 : vector<2x8x8xf32> to vector<2x1x8x8xf32>
    %35 = vector.shape_cast %30 : vector<2x8x8xf32> to vector<2x1x8x8xf32>
    %36 = vector.shape_cast %32 : vector<2x8x8xf32> to vector<2x1x8x8xf32>
    %37 = tpu.concatenate %33, %34, %35, %36 in 1 : vector<2x1x8x8xf32>, vector<2x1x8x8xf32>, vector<2x1x8x8xf32>, vector<2x1x8x8xf32> -> vector<2x4x8x8xf32>
    %38 = vector.shape_cast %37 : vector<2x4x8x8xf32> to vector<8x8x8xf32>
    %39 = vector.extract_strided_slice %10 {offsets = [0, 64], sizes = [16, 8], strides = [1, 1]} : vector<16x96xf32> to vector<16x8xf32>
    %40 = vector.shape_cast %39 : vector<16x8xf32> to vector<2x8x8xf32>
    %41 = vector.extract_strided_slice %10 {offsets = [0, 72], sizes = [16, 8], strides = [1, 1]} : vector<16x96xf32> to vector<16x8xf32>
    %42 = vector.shape_cast %41 : vector<16x8xf32> to vector<2x8x8xf32>
    %43 = vector.extract_strided_slice %10 {offsets = [0, 80], sizes = [16, 8], strides = [1, 1]} : vector<16x96xf32> to vector<16x8xf32>
    %44 = vector.shape_cast %43 : vector<16x8xf32> to vector<2x8x8xf32>
    %45 = vector.extract_strided_slice %10 {offsets = [0, 88], sizes = [16, 8], strides = [1, 1]} : vector<16x96xf32> to vector<16x8xf32>
    %46 = vector.shape_cast %45 : vector<16x8xf32> to vector<2x8x8xf32>
    %47 = vector.shape_cast %40 : vector<2x8x8xf32> to vector<2x1x8x8xf32>
    %48 = vector.shape_cast %42 : vector<2x8x8xf32> to vector<2x1x8x8xf32>
    %49 = vector.shape_cast %44 : vector<2x8x8xf32> to vector<2x1x8x8xf32>
    %50 = vector.shape_cast %46 : vector<2x8x8xf32> to vector<2x1x8x8xf32>
    %51 = tpu.concatenate %47, %48, %49, %50 in 1 : vector<2x1x8x8xf32>, vector<2x1x8x8xf32>, vector<2x1x8x8xf32>, vector<2x1x8x8xf32> -> vector<2x4x8x8xf32>
    %52 = vector.shape_cast %51 : vector<2x4x8x8xf32> to vector<8x8x8xf32>
    "tpu.trace_start"() <{level = 10 : i32, message = "bqd,bkd->bqk"}> : () -> ()
    %cst_8 = arith.constant dense<0.000000e+00> : vector<8x8x8xf32>
    %53 = tpu.matmul %24, %38, %cst_8 {dimension_numbers = #tpu.dot_dimension_numbers<[2], [2], [1], [1], [0, 0, 0, 1, 1, 1], [0], [0]>} : vector<8x8x8xf32>, vector<8x8x8xf32>, vector<8x8x8xf32> -> vector<8x8x8xf32>
    "tpu.trace_stop"() : () -> ()
    %cst_9 = arith.constant 0.353553385 : f32
    %54 = vector.broadcast %cst_9 : f32 to vector<8x8x8xf32>
    %55 = arith.mulf %53, %54 : vector<8x8x8xf32>
    %cst_10 = arith.constant dense<0xFF800000> : vector<8x8xf32>
    %56 = vector.multi_reduction <maximumf>, %55, %cst_10 [2] : vector<8x8x8xf32> to vector<8x8xf32>
    %57 = vector.shape_cast %56 : vector<8x8xf32> to vector<8x8x1xf32>
    %58 = vector.broadcast %57 : vector<8x8x1xf32> to vector<8x8x8xf32>
    %59 = arith.subf %55, %58 : vector<8x8x8xf32>
    %60 = math.exp %59 : vector<8x8x8xf32>
    %cst_11 = arith.constant dense<0.000000e+00> : vector<8x8xf32>
    %61 = vector.multi_reduction <add>, %60, %cst_11 [2] : vector<8x8x8xf32> to vector<8x8xf32>
    %62 = vector.shape_cast %61 : vector<8x8xf32> to vector<8x8x1xf32>
    %63 = tpu.reciprocal %62 {approx = true} : vector<8x8x1xf32> -> vector<8x8x1xf32>
    %64 = vector.broadcast %63 : vector<8x8x1xf32> to vector<8x8x8xf32>
    %65 = arith.mulf %60, %64 : vector<8x8x8xf32>
    "tpu.trace_start"() <{level = 10 : i32, message = "bqk,bkd->bqd"}> : () -> ()
    %cst_12 = arith.constant dense<0.000000e+00> : vector<8x8x8xf32>
    %66 = tpu.matmul %65, %52, %cst_12 {dimension_numbers = #tpu.dot_dimension_numbers<[2], [1], [1], [2], [0, 0, 0, 1, 1, 2], [0], [0]>} : vector<8x8x8xf32>, vector<8x8x8xf32>, vector<8x8x8xf32> -> vector<8x8x8xf32>
    "tpu.trace_stop"() : () -> ()
    %67 = vector.shape_cast %66 : vector<8x8x8xf32> to vector<2x4x8x8xf32>
    %68 = vector.extract_strided_slice %67 {offsets = [0, 0, 0, 0], sizes = [2, 1, 8, 8], strides = [1, 1, 1, 1]} : vector<2x4x8x8xf32> to vector<2x1x8x8xf32>
    %69 = vector.shape_cast %68 : vector<2x1x8x8xf32> to vector<2x8x8xf32>
    %70 = vector.shape_cast %69 : vector<2x8x8xf32> to vector<16x8xf32>
    %71 = vector.extract_strided_slice %67 {offsets = [0, 1, 0, 0], sizes = [2, 1, 8, 8], strides = [1, 1, 1, 1]} : vector<2x4x8x8xf32> to vector<2x1x8x8xf32>
    %72 = vector.shape_cast %71 : vector<2x1x8x8xf32> to vector<2x8x8xf32>
    %73 = vector.shape_cast %72 : vector<2x8x8xf32> to vector<16x8xf32>
    %74 = vector.extract_strided_slice %67 {offsets = [0, 2, 0, 0], sizes = [2, 1, 8, 8], strides = [1, 1, 1, 1]} : vector<2x4x8x8xf32> to vector<2x1x8x8xf32>
    %75 = vector.shape_cast %74 : vector<2x1x8x8xf32> to vector<2x8x8xf32>
    %76 = vector.shape_cast %75 : vector<2x8x8xf32> to vector<16x8xf32>
    %77 = vector.extract_strided_slice %67 {offsets = [0, 3, 0, 0], sizes = [2, 1, 8, 8], strides = [1, 1, 1, 1]} : vector<2x4x8x8xf32> to vector<2x1x8x8xf32>
    %78 = vector.shape_cast %77 : vector<2x1x8x8xf32> to vector<2x8x8xf32>
    %79 = vector.shape_cast %78 : vector<2x8x8xf32> to vector<16x8xf32>
    %80 = tpu.concatenate %70, %73, %76, %79 in 1 : vector<16x8xf32>, vector<16x8xf32>, vector<16x8xf32>, vector<16x8xf32> -> vector<16x32xf32>
    %c0_13 = arith.constant 0 : index
    %c0_14 = arith.constant 0 : index
    %c0_15 = arith.constant 0 : index
    %81 = vector.load %arg4[%c0_13, %c0_14, %c0_15] : memref<1x32x32xf32, #tpu.memory_space<vmem>>, vector<1x32x32xf32>
    %82 = vector.shape_cast %81 : vector<1x32x32xf32> to vector<32x32xf32>
    %cst_16 = arith.constant dense<0.000000e+00> : vector<16x32xf32>
    %83 = tpu.matmul %80, %82, %cst_16 {dimension_numbers = #tpu.dot_dimension_numbers<[1], [0], [0], [1], [0, 0, 1, 1], [], []>} : vector<16x32xf32>, vector<32x32xf32>, vector<16x32xf32> -> vector<16x32xf32>
    %c0_17 = arith.constant 0 : index
    %c0_18 = arith.constant 0 : index
    %c0_19 = arith.constant 0 : index
    %84 = vector.load %arg5[%c0_17, %c0_18, %c0_19] : memref<1x1x32xf32, #tpu.memory_space<vmem>>, vector<1x1x32xf32>
    %85 = vector.shape_cast %84 : vector<1x1x32xf32> to vector<1x32xf32>
    %86 = vector.broadcast %85 : vector<1x32xf32> to vector<16x32xf32>
    %87 = arith.addf %83, %86 : vector<16x32xf32>
    %88 = arith.addf %3, %87 : vector<16x32xf32>
    %c0_20 = arith.constant 0 : index
    %c0_21 = arith.constant 0 : index
    %c0_22 = arith.constant 0 : index
    %89 = vector.load %arg6[%c0_20, %c0_21, %c0_22] : memref<1x1x32xf32, #tpu.memory_space<vmem>>, vector<1x1x32xf32>
    %90 = vector.shape_cast %89 : vector<1x1x32xf32> to vector<1x32xf32>
    %c0_23 = arith.constant 0 : index
    %c0_24 = arith.constant 0 : index
    %c0_25 = arith.constant 0 : index
    %91 = vector.load %arg7[%c0_23, %c0_24, %c0_25] : memref<1x1x32xf32, #tpu.memory_space<vmem>>, vector<1x1x32xf32>
    %92 = vector.shape_cast %91 : vector<1x1x32xf32> to vector<1x32xf32>
    %cst_26 = arith.constant dense<0.000000e+00> : vector<16xf32>
    %93 = vector.multi_reduction <add>, %88, %cst_26 [1] : vector<16x32xf32> to vector<16xf32>
    %94 = vector.shape_cast %93 : vector<16xf32> to vector<16x1xf32>
    %cst_27 = arith.constant 3.200000e+01 : f32
    %95 = vector.broadcast %cst_27 : f32 to vector<16x1xf32>
    %96 = arith.divf %94, %95 : vector<16x1xf32>
    %97 = vector.broadcast %96 : vector<16x1xf32> to vector<16x32xf32>
    %98 = arith.subf %88, %97 : vector<16x32xf32>
    %99 = arith.mulf %98, %98 : vector<16x32xf32>
    %cst_28 = arith.constant dense<0.000000e+00> : vector<16xf32>
    %100 = vector.multi_reduction <add>, %99, %cst_28 [1] : vector<16x32xf32> to vector<16xf32>
    %101 = vector.shape_cast %100 : vector<16xf32> to vector<16x1xf32>
    %cst_29 = arith.constant 3.200000e+01 : f32
    %102 = vector.broadcast %cst_29 : f32 to vector<16x1xf32>
    %103 = arith.divf %101, %102 : vector<16x1xf32>
    %cst_30 = arith.constant 9.99999974E-6 : f32
    %104 = vector.broadcast %cst_30 : f32 to vector<16x1xf32>
    %105 = arith.addf %103, %104 : vector<16x1xf32>
    %106 = math.rsqrt %105 : vector<16x1xf32>
    %107 = vector.broadcast %96 : vector<16x1xf32> to vector<16x32xf32>
    %108 = arith.subf %88, %107 : vector<16x32xf32>
    %109 = vector.broadcast %106 : vector<16x1xf32> to vector<16x32xf32>
    %110 = arith.mulf %108, %109 : vector<16x32xf32>
    %111 = vector.broadcast %90 : vector<1x32xf32> to vector<16x32xf32>
    %112 = arith.mulf %110, %111 : vector<16x32xf32>
    %113 = vector.broadcast %92 : vector<1x32xf32> to vector<16x32xf32>
    %114 = arith.addf %112, %113 : vector<16x32xf32>
    %c0_31 = arith.constant 0 : index
    %c0_32 = arith.constant 0 : index
    %c0_33 = arith.constant 0 : index
    %115 = vector.load %arg8[%c0_31, %c0_32, %c0_33] : memref<1x32x64xf32, #tpu.memory_space<vmem>>, vector<1x32x64xf32>
    %116 = vector.shape_cast %115 : vector<1x32x64xf32> to vector<32x64xf32>
    %cst_34 = arith.constant dense<0.000000e+00> : vector<16x64xf32>
    %117 = tpu.matmul %114, %116, %cst_34 {dimension_numbers = #tpu.dot_dimension_numbers<[1], [0], [0], [1], [0, 0, 1, 1], [], []>} : vector<16x32xf32>, vector<32x64xf32>, vector<16x64xf32> -> vector<16x64xf32>
    %c0_35 = arith.constant 0 : index
    %c0_36 = arith.constant 0 : index
    %c0_37 = arith.constant 0 : index
    %118 = vector.load %arg9[%c0_35, %c0_36, %c0_37] : memref<1x1x64xf32, #tpu.memory_space<vmem>>, vector<1x1x64xf32>
    %119 = vector.shape_cast %118 : vector<1x1x64xf32> to vector<1x64xf32>
    %120 = vector.broadcast %119 : vector<1x64xf32> to vector<16x64xf32>
    %121 = arith.addf %117, %120 : vector<16x64xf32>
    %cst_38 = arith.constant 0.000000e+00 : f32
    %122 = vector.broadcast %cst_38 : f32 to vector<16x64xf32>
    %123 = arith.maximumf %121, %122 : vector<16x64xf32>
    %c0_39 = arith.constant 0 : index
    %c0_40 = arith.constant 0 : index
    %c0_41 = arith.constant 0 : index
    %124 = vector.load %arg10[%c0_39, %c0_40, %c0_41] : memref<1x64x32xf32, #tpu.memory_space<vmem>>, vector<1x64x32xf32>
    %125 = vector.shape_cast %124 : vector<1x64x32xf32> to vector<64x32xf32>
    %cst_42 = arith.constant dense<0.000000e+00> : vector<16x32xf32>
    %126 = tpu.matmul %123, %125, %cst_42 {dimension_numbers = #tpu.dot_dimension_numbers<[1], [0], [0], [1], [0, 0, 1, 1], [], []>} : vector<16x64xf32>, vector<64x32xf32>, vector<16x32xf32> -> vector<16x32xf32>
    %c0_43 = arith.constant 0 : index
    %c0_44 = arith.constant 0 : index
    %c0_45 = arith.constant 0 : index
    %127 = vector.load %arg11[%c0_43, %c0_44, %c0_45] : memref<1x1x32xf32, #tpu.memory_space<vmem>>, vector<1x1x32xf32>
    %128 = vector.shape_cast %127 : vector<1x1x32xf32> to vector<1x32xf32>
    %129 = vector.broadcast %128 : vector<1x32xf32> to vector<16x32xf32>
    %130 = arith.addf %126, %129 : vector<16x32xf32>
    %131 = arith.addf %114, %130 : vector<16x32xf32>
    %c0_46 = arith.constant 0 : index
    %c0_47 = arith.constant 0 : index
    %c0_48 = arith.constant 0 : index
    %132 = vector.load %arg12[%c0_46, %c0_47, %c0_48] : memref<1x1x32xf32, #tpu.memory_space<vmem>>, vector<1x1x32xf32>
    %133 = vector.shape_cast %132 : vector<1x1x32xf32> to vector<1x32xf32>
    %c0_49 = arith.constant 0 : index
    %c0_50 = arith.constant 0 : index
    %c0_51 = arith.constant 0 : index
    %134 = vector.load %arg13[%c0_49, %c0_50, %c0_51] : memref<1x1x32xf32, #tpu.memory_space<vmem>>, vector<1x1x32xf32>
    %135 = vector.shape_cast %134 : vector<1x1x32xf32> to vector<1x32xf32>
    %cst_52 = arith.constant dense<0.000000e+00> : vector<16xf32>
    %136 = vector.multi_reduction <add>, %131, %cst_52 [1] : vector<16x32xf32> to vector<16xf32>
    %137 = vector.shape_cast %136 : vector<16xf32> to vector<16x1xf32>
    %cst_53 = arith.constant 3.200000e+01 : f32
    %138 = vector.broadcast %cst_53 : f32 to vector<16x1xf32>
    %139 = arith.divf %137, %138 : vector<16x1xf32>
    %140 = vector.broadcast %139 : vector<16x1xf32> to vector<16x32xf32>
    %141 = arith.subf %131, %140 : vector<16x32xf32>
    %142 = arith.mulf %141, %141 : vector<16x32xf32>
    %cst_54 = arith.constant dense<0.000000e+00> : vector<16xf32>
    %143 = vector.multi_reduction <add>, %142, %cst_54 [1] : vector<16x32xf32> to vector<16xf32>
    %144 = vector.shape_cast %143 : vector<16xf32> to vector<16x1xf32>
    %cst_55 = arith.constant 3.200000e+01 : f32
    %145 = vector.broadcast %cst_55 : f32 to vector<16x1xf32>
    %146 = arith.divf %144, %145 : vector<16x1xf32>
    %cst_56 = arith.constant 9.99999974E-6 : f32
    %147 = vector.broadcast %cst_56 : f32 to vector<16x1xf32>
    %148 = arith.addf %146, %147 : vector<16x1xf32>
    %149 = math.rsqrt %148 : vector<16x1xf32>
    %150 = vector.broadcast %139 : vector<16x1xf32> to vector<16x32xf32>
    %151 = arith.subf %131, %150 : vector<16x32xf32>
    %152 = vector.broadcast %149 : vector<16x1xf32> to vector<16x32xf32>
    %153 = arith.mulf %151, %152 : vector<16x32xf32>
    %154 = vector.broadcast %133 : vector<1x32xf32> to vector<16x32xf32>
    %155 = arith.mulf %153, %154 : vector<16x32xf32>
    %156 = vector.broadcast %135 : vector<1x32xf32> to vector<16x32xf32>
    %157 = arith.addf %155, %156 : vector<16x32xf32>
    %c0_57 = arith.constant 0 : index
    %c0_58 = arith.constant 0 : index
    %158 = vector.load %arg14[%c0_57, %c0_58] : memref<1x32xf32, #tpu.memory_space<vmem>>, vector<1x32xf32>
    %c0_59 = arith.constant 0 : index
    %c0_60 = arith.constant 0 : index
    %159 = vector.load %arg15[%c0_59, %c0_60] : memref<1x32xf32, #tpu.memory_space<vmem>>, vector<1x32xf32>
    %cst_61 = arith.constant dense<0.000000e+00> : vector<16xf32>
    %160 = vector.multi_reduction <add>, %157, %cst_61 [1] : vector<16x32xf32> to vector<16xf32>
    %161 = vector.shape_cast %160 : vector<16xf32> to vector<16x1xf32>
    %cst_62 = arith.constant 3.200000e+01 : f32
    %162 = vector.broadcast %cst_62 : f32 to vector<16x1xf32>
    %163 = arith.divf %161, %162 : vector<16x1xf32>
    %164 = vector.broadcast %163 : vector<16x1xf32> to vector<16x32xf32>
    %165 = arith.subf %157, %164 : vector<16x32xf32>
    %166 = arith.mulf %165, %165 : vector<16x32xf32>
    %cst_63 = arith.constant dense<0.000000e+00> : vector<16xf32>
    %167 = vector.multi_reduction <add>, %166, %cst_63 [1] : vector<16x32xf32> to vector<16xf32>
    %168 = vector.shape_cast %167 : vector<16xf32> to vector<16x1xf32>
    %cst_64 = arith.constant 3.200000e+01 : f32
    %169 = vector.broadcast %cst_64 : f32 to vector<16x1xf32>
    %170 = arith.divf %168, %169 : vector<16x1xf32>
    %cst_65 = arith.constant 9.99999974E-6 : f32
    %171 = vector.broadcast %cst_65 : f32 to vector<16x1xf32>
    %172 = arith.addf %170, %171 : vector<16x1xf32>
    %173 = math.rsqrt %172 : vector<16x1xf32>
    %174 = vector.broadcast %163 : vector<16x1xf32> to vector<16x32xf32>
    %175 = arith.subf %157, %174 : vector<16x32xf32>
    %176 = vector.broadcast %173 : vector<16x1xf32> to vector<16x32xf32>
    %177 = arith.mulf %175, %176 : vector<16x32xf32>
    %178 = vector.broadcast %158 : vector<1x32xf32> to vector<16x32xf32>
    %179 = arith.mulf %177, %178 : vector<16x32xf32>
    %180 = vector.broadcast %159 : vector<1x32xf32> to vector<16x32xf32>
    %181 = arith.addf %179, %180 : vector<16x32xf32>
    %c0_66 = arith.constant 0 : index
    %c0_67 = arith.constant 0 : index
    %182 = vector.load %arg17[%c0_66, %c0_67] : memref<16x32xf32, #tpu.memory_space<vmem>>, vector<16x32xf32>
    tpu.vector_store %arg17[%c0_66, %c0_67], %181 {strides = array<i32>} : memref<16x32xf32, #tpu.memory_space<vmem>>, vector<16x32xf32>,
    %c0_68 = arith.constant 0 : index
    %c0_69 = arith.constant 0 : index
    %c0_70 = arith.constant 0 : index
    %183 = vector.load %arg16[%c0_68, %c0_69, %c0_70] : memref<1x16x32xf32, #tpu.memory_space<vmem>>, vector<1x16x32xf32>
    %184 = vector.shape_cast %183 : vector<1x16x32xf32> to vector<16x32xf32>
    %185 = vector.shape_cast %181 : vector<16x32xf32> to vector<1x16x32xf32>
    tpu.vector_store %arg16[%c0_68, %c0_69, %c0_70], %185 {strides = array<i32>} : memref<1x16x32xf32, #tpu.memory_space<vmem>>, vector<1x16x32xf32>,
    return
  }
  func.func @transform_0(%arg0: i32) -> (i32, i32) {
    %c0_i32 = arith.constant 0 : i32
    %c0_i32_0 = arith.constant 0 : i32
    %c0_i32_1 = arith.constant 0 : i32
    return %c0_i32, %c0_i32_0 : i32, i32
  }
  func.func @transform_1(%arg0: i32) -> (i32, i32, i32) {
    %c0_i32 = arith.constant 0 : i32
    %c0_i32_0 = arith.constant 0 : i32
    %c0_i32_1 = arith.constant 0 : i32
    return %arg0, %c0_i32, %c0_i32_0 : i32, i32, i32
  }
  func.func @transform_2(%arg0: i32) -> (i32, i32, i32) {
    %c0_i32 = arith.constant 0 : i32
    %c0_i32_0 = arith.constant 0 : i32
    %c0_i32_1 = arith.constant 0 : i32
    return %arg0, %c0_i32, %c0_i32_0 : i32, i32, i32
  }
  func.func @transform_3(%arg0: i32) -> (i32, i32, i32) {
    %c0_i32 = arith.constant 0 : i32
    %c0_i32_0 = arith.constant 0 : i32
    %c0_i32_1 = arith.constant 0 : i32
    return %arg0, %c0_i32, %c0_i32_0 : i32, i32, i32
  }
  func.func @transform_4(%arg0: i32) -> (i32, i32, i32) {
    %c0_i32 = arith.constant 0 : i32
    %c0_i32_0 = arith.constant 0 : i32
    %c0_i32_1 = arith.constant 0 : i32
    return %arg0, %c0_i32, %c0_i32_0 : i32, i32, i32
  }
  func.func @transform_5(%arg0: i32) -> (i32, i32, i32) {
    %c0_i32 = arith.constant 0 : i32
    %c0_i32_0 = arith.constant 0 : i32
    %c0_i32_1 = arith.constant 0 : i32
    return %arg0, %c0_i32, %c0_i32_0 : i32, i32, i32
  }
  func.func @transform_6(%arg0: i32) -> (i32, i32, i32) {
    %c0_i32 = arith.constant 0 : i32
    %c0_i32_0 = arith.constant 0 : i32
    %c0_i32_1 = arith.constant 0 : i32
    return %arg0, %c0_i32, %c0_i32_0 : i32, i32, i32
  }
  func.func @transform_7(%arg0: i32) -> (i32, i32, i32) {
    %c0_i32 = arith.constant 0 : i32
    %c0_i32_0 = arith.constant 0 : i32
    %c0_i32_1 = arith.constant 0 : i32
    return %arg0, %c0_i32, %c0_i32_0 : i32, i32, i32
  }
  func.func @transform_8(%arg0: i32) -> (i32, i32, i32) {
    %c0_i32 = arith.constant 0 : i32
    %c0_i32_0 = arith.constant 0 : i32
    %c0_i32_1 = arith.constant 0 : i32
    return %arg0, %c0_i32, %c0_i32_0 : i32, i32, i32
  }
  func.func @transform_9(%arg0: i32) -> (i32, i32, i32) {
    %c0_i32 = arith.constant 0 : i32
    %c0_i32_0 = arith.constant 0 : i32
    %c0_i32_1 = arith.constant 0 : i32
    return %arg0, %c0_i32, %c0_i32_0 : i32, i32, i32
  }
  func.func @transform_10(%arg0: i32) -> (i32, i32, i32) {
    %c0_i32 = arith.constant 0 : i32
    %c0_i32_0 = arith.constant 0 : i32
    %c0_i32_1 = arith.constant 0 : i32
    return %arg0, %c0_i32, %c0_i32_0 : i32, i32, i32
  }
  func.func @transform_11(%arg0: i32) -> (i32, i32, i32) {
    %c0_i32 = arith.constant 0 : i32
    %c0_i32_0 = arith.constant 0 : i32
    %c0_i32_1 = arith.constant 0 : i32
    return %arg0, %c0_i32, %c0_i32_0 : i32, i32, i32
  }
  func.func @transform_12(%arg0: i32) -> (i32, i32, i32) {
    %c0_i32 = arith.constant 0 : i32
    %c0_i32_0 = arith.constant 0 : i32
    %c0_i32_1 = arith.constant 0 : i32
    return %arg0, %c0_i32, %c0_i32_0 : i32, i32, i32
  }
  func.func @transform_13(%arg0: i32) -> (i32, i32) {
    %c0_i32 = arith.constant 0 : i32
    %c0_i32_0 = arith.constant 0 : i32
    %c0_i32_1 = arith.constant 0 : i32
    return %c0_i32, %c0_i32_0 : i32, i32
  }
  func.func @transform_14(%arg0: i32) -> (i32, i32) {
    %c0_i32 = arith.constant 0 : i32
    %c0_i32_0 = arith.constant 0 : i32
    %c0_i32_1 = arith.constant 0 : i32
    return %c0_i32, %c0_i32_0 : i32, i32
  }
  func.func @transform_15(%arg0: i32) -> (i32, i32, i32) {
    %c0_i32 = arith.constant 0 : i32
    %c0_i32_0 = arith.constant 0 : i32
    %c0_i32_1 = arith.constant 0 : i32
    return %arg0, %c0_i32, %c0_i32_0 : i32, i32, i32
  }
}

</mosaic_0001>

<bundles_post_ra>
// kernel: encoder_forward.1
= control target key start
LH: loop header
LB: loop body
LE: loop exit
PB: predicated region body
PF: predicated region fallthrough
CT: control target
= control target key end

     0   :  { %s3707_s0 = inlined_call_operand.vmem [shape: f32[16,32], index: 0, kind: input, shape index: {}]   ;;  %s3708_s1 = inlined_call_operand.vmem [shape: f32[2,32,96], index: 1, kind: input, shape index: {}]   ;;  %s3709_s2 = inlined_call_operand.vmem [shape: f32[2,1,96], index: 2, kind: input, shape index: {}]   ;;  %s3710_s3 = inlined_call_operand.vmem [shape: f32[2,32,32], index: 3, kind: input, shape index: {}]   ;;  %s3711_s4 = inlined_call_operand.hbm [shape: f32[2,1,32], index: 4, kind: input, shape index: {}]   ;;  %s3712_s5 = inlined_call_operand.vmem [shape: f32[2,1,32], index: 5, kind: input, shape index: {}]   ;;  %s3713_s6 = inlined_call_operand.vmem [shape: f32[2,1,32], index: 6, kind: input, shape index: {}]   ;;  %s3714_s7 = inlined_call_operand.vmem [shape: f32[2,32,64], index: 7, kind: input, shape index: {}]   ;;  %s3715_s8 = inlined_call_operand.vmem [shape: f32[2,1,64], index: 8, kind: input, shape index: {}]   ;;  %s3716_s9 = inlined_call_operand.vmem [shape: f32[2,64,32], index: 9, kind: input, shape index: {}]   ;;  %s3717_s10 = inlined_call_operand.vmem [shape: f32[2,1,32], index: 10, kind: input, shape index: {}]   ;;  %s3718_s11 = inlined_call_operand.vmem [shape: f32[2,1,32], index: 11, kind: input, shape index: {}]   ;;  %s3719_s12 = inlined_call_operand.vmem [shape: f32[2,1,32], index: 12, kind: input, shape index: {}]   ;;  %s3720_s13 = inlined_call_operand.vmem [shape: f32[1,32], index: 13, kind: input, shape index: {}]   ;;  %s3721_s14 = inlined_call_operand.vmem [shape: f32[1,32], index: 14, kind: input, shape index: {}]   ;;  %s3722_s15 = inlined_call_operand.vmem [shape: f32[2,16,32], index: 15, kind: output, shape index: {}]  }
   0x1   :  { %3728 = sst [smem:[#allocation11_spill]] %s3707_s0 }
   0x2   :  { %3729 = sst [smem:[#allocation12_spill]] %s3708_s1 }
   0x3   :  { %3730 = sst [smem:[#allocation13_spill]] %s3710_s3 }
   0x4   :  { %3731 = sst [smem:[#allocation14_spill]] %s3711_s4 }
   0x5   :  { %3732 = sst [smem:[#allocation15_spill]] %s3714_s7 }
   0x6   :  { %3733 = sst [smem:[#allocation16_spill]] %s3720_s13 }
   0x7   :  { %3734 = sst [smem:[#allocation17_spill]] %s3721_s14 }
   0x8   :  { %20 = vsyncpa [#allocation4], 0 }
   0x9   :  { %22 = vsyncpa [#allocation4 + $0x1], 0  ;;  %s3296_s18 = smov 0   ;;  %s3298_s19 = smov 0  }
   0xa   :  { %s3300_s20 = smov 0   ;;  %s3302_s21 = smov 0  }
   0xb LB: > { %3735 = sst [smem:[#allocation6_spill]] %s3195_s19  ;;  %s3315_s22 = sadd.s32 4294967295, %s3203_s21   ;;  %s3203_s21 = sphi %s3302_s21, %s3757_s21   ;;  %s3199_s20 = sphi %s3300_s20, %s3760_s20   ;;  %s3195_s19 = sphi %s3298_s19, %s3759_s19   ;;  %s3191_s18 = sphi %s3296_s18, %s3758_s18  }
   0xc   : > { %3736 = sst [smem:[#allocation7_spill]] %s3199_s20  ;;  %s3318_s23 = sadd.s32 1, %s3203_s21  }
   0xd   : > { %3737 = sst [smem:[#allocation8_spill]] %s3318_s23  ;;  %s131_s24 = ssub.s32 %s3203_s21, %s3318_s23 }
   0xe   : > { %s134_s25 = sadd.s32 1, %s3199_s20  ;;  %p132_p0 = scmp.eq.s32.totalorder %s131_s24, 0 }
   0xf   : > { %p141_p1 = scmp.ne.s32.totalorder %s3199_s20, %s3195_s19  ;;  %p142_p2 = scmp.eq.s32.totalorder %s3203_s21, 0 }
  0x10   : > { %p147_p3 = scmp.ne.s32.totalorder %s3195_s19, %s3191_s18  ;;  %p148_p5 = scmp.eq.s32.totalorder %s3315_s22, 0 }
  0x11   : > { %s3328_s26 = scalar_select %p132_p0, %s3199_s20, %s134_s25  }
  0x12   : > { %p143_p4 = por %p142_p2, %p141_p1  ;;  %p3052_p6 = scmp.lt.s32.totalorder %s3203_s21, 2 }
  0x13   : > { %3738 = sst [smem:[#allocation9_spill]] %s3328_s26  ;;  %p3332_p7 = por %p148_p5, %p147_p3 }
  0x14   : > { %s478_s28 = sand.u32 1, %s3199_s20   ;;  %s2752_s29 = sshll.u32 %s3203_s21, 4 }
  0x15   : > { %s481_s30 = scalar_lea.vmem [#allocation3], %s478_s28  ;;  %s3740_s4 = sld [smem:[#allocation14_spill]] }
  0x16   : > { %s488_s16 = sshll.u32 %s481_s30, 4  ;;  %p3345_p8 = pnand %p3052_p6, %p143_p4  ;;  %s3343_s16 = int_to_ptr.vmem [resolvable:$true] %s488_s16 }
  0x17   : > { %s479_s25 = scalar_lea.sflag [#allocation4], %s478_s28 }
  0x18   : > { %p3141_p12 = pneg %p3345_p8 }
  0x1b   : > { %s3341_s23 = scalar_lea.hbm %s3740_s4, %s2752_s29  ;;  %s3144_s24 = scalar_lea.hbm %s3740_s4, 32 }
  0x1c   : > { %s3139_s30 = scalar_lea.hbm %s3341_s23, 16  ;;  %p3145_p1 = scmp.lt.u32.totalorder %s3341_s23, %s3740_s4 }
  0x1d   : > { %p3140_p11 = scmp.ne.s32.totalorder %s3341_s23, %s3139_s30  ;;  %p3146_p2 = scmp.lt.u32.totalorder %s3144_s24, %s3139_s30 }
  0x1e   : > { %p3148_p4 = scmp.lt.u32.totalorder %s3139_s30, %s3341_s23 }
  0x1f   : > { %p3142_p13 = pnand %p3141_p12, %p3140_p11  ;;  %p3147_p3 = por %p3146_p2, %p3145_p1 }
  0x21   : > { %p3143_p0 = pneg %p3142_p13  ;;  %p3149_p5 = por %p3148_p4, %p3147_p3 }
  0x23   : > { %p3150_p6 = pnand %p3149_p5, %p3143_p0 }
  0x25   : > { %3153 = shalt.err (!%p3150_p6)
}
  0x26   : > { %s3154_s28 = scalar_lea.vmem %s3343_s16, 16  ;;  %s3205_s29 = smov [#allocation3]  }
  0x27   : > { %p3155_p11 = scmp.ne.s32.totalorder %s3343_s16, %s3154_s28  ;;  %s3159_s17 = sshll.u32 %s3205_s29, 4  ;;  %s3160_s17 = int_to_ptr.vmem [resolvable:$false] %s3159_s17 }
  0x28   : > { %s3161_s20 = scalar_lea.vmem %s3160_s17, 32  ;;  %p3162_p10 = scmp.lt.s32.totalorder %s3343_s16, %s3160_s17 }
  0x29   : > { %p3157_p13 = pnand %p3155_p11, %p3141_p12  ;;  %p3163_p1 = scmp.lt.s32.totalorder %s3161_s20, %s3154_s28 }
  0x2b   : > { %p3158_p9 = pneg %p3157_p13  ;;  %p3164_p2 = por %p3163_p1, %p3162_p10 }
  0x2d   : > { %p3165_p3 = pnand %p3164_p2, %p3158_p9 }
  0x2f   : > { %3168 = shalt.err (!%p3165_p3)
}
  0x30   : > { %3051 = dma.hbm_to_vmem [thread:$0]  (!%p3345_p8), %s3341_s23, 16, %s3343_s16, %s479_s25  }
  0x31   : > { %p3742_p0 = scmp.lt.s32.totalorder %s3203_s21, 3  ;;  %p3743_p4 = scmp.ge.s32.totalorder %s3203_s21, 1 }
  0x33   : > { %p546_p12 = pnand %p3743_p4, %p3742_p0 }
  0x35   : > { %549 = sbr.rel (%p546_p12) target bundleno = 3015 (0xbc7), region = 80 }
  0x3c   : > { %s551_s26 = sand.u32 1, %s3195_s19  }
  0x3d   : > { %s552_s30 = scalar_lea.sflag [#allocation4], %s551_s26  ;;  %s3381_s24 = scalar_lea.vmem [#allocation3], %s551_s26 }
  0x3e   : > { %3744 = sst [smem:[#allocation10_spill]] %s3381_s24 }
  0x3f   : > { %3186 = dma.done.wait (%p3332_p7), %s552_s30, 16  }
  0x40   : > { %3188 = vsyncadd (%p3332_p7), %s552_s30, 4294967280  ;;  %p641_p9 = scmp.lt.s32.totalorder %s3315_s22, 1  ;;  %s3745_s1 = sld [smem:[#allocation12_spill]] }
  0x41   : > { %s3746_s3 = sld [smem:[#allocation13_spill]]  ;;  %s3747_s7 = sld [smem:[#allocation15_spill]] }
  0x42   : > { %s3389_s18 = scalar_select %p641_p9, %s3315_s22, 1 }
  0x43   : > { %p2764_p7 = scmp.ne.s32.totalorder %s3315_s22, 0 }
  0x44   : > { %s2809_s21 = sshll.u32 %s3389_s18, 5  ;;  %s2812_s17 = sshll.u32 %s3389_s18, 6  ;;  %vm693_vm0 = vcmask (!%p2764_p7), 261120  }
  0x45   : > { %s3429_s19 = scalar_lea.vmem %s3716_s9, %s2812_s17  ;;  %s678_s0 = scalar_lea.vmem %s3718_s11, %s3389_s18 }
  0x46   : > { %s645_s29 = scalar_lea.vmem %s3745_s1, %s2809_s21  ;;  %s681_s24 = scalar_lea.vmem %s3719_s12, %s3389_s18 }
  0x47   : > { %s3402_s26 = scalar_lea.vmem %s3746_s3, %s2809_s21  ;;  %s3415_s16 = scalar_lea.vmem %s3747_s7, %s2809_s21 }
  0x48   : > { %s675_s3 = scalar_lea.vmem %s3717_s10, %s3389_s18  ;;  %s2813_s25 = sshll.u32 %s3389_s18, 4 }
  0x49   : > { %s3443_s7 = scalar_lea.vmem %s3722_s15, %s2813_s25  ;;  %690 = sbr.rel (%p2764_p7) target bundleno = 83 (0x53), region = 88 }
  0x4a   : > { %s3748_s20 = sld [smem:[#allocation11_spill]] (!%p2764_p7) }
  0x50   : > { %s3749_s4 = smov %s3748_s20  ;;  %v691_v0 = vld [vmem:[%s3748_s20] sm:$0xff] }
  0x51   : > { %v692_v1 = vld [vmem:[%s3749_s4 + $0x8] sm:$0xff]  ;;  %694 = vst.msk [vmem:[#allocation2] sm:$0xff] %vm693_vm0, %v691_v0 }
  0x52   : > { %695 = vst.msk [vmem:[#allocation2 + $0x8] sm:$0xff] %vm693_vm0, %v692_v1 }
  0x53 PF: > { %v698_v2 = vld [vmem:[%s645_s29] sm:$0xff]  ;;  %v699_v3 = vld [vmem:[%s645_s29 + $0x8] sm:$0xff]  ;;  %v700_v4 = vld [vmem:[%s645_s29 + $0x10] sm:$0xff]  ;;  %vm709_vm1 = vcmask 261120   ;;  %s3750_s14 = scalar_lea.vmem %s3709_s2, %s3389_s18  ;;  %v3206_v12 = vmov 0.0   ;;  %s3208_s21 = smov 120  }
  0x54   : > { %v3006_v5 = vpack.c.bf16 %v699_v3, %v698_v2  ;;  %v701_v6 = vld [vmem:[%s645_s29 + $0x18] sm:$0xff]  ;;  %v2765_v10 = vld [vmem:[%s3750_s14] ss:$0 sm:$0xff]  ;;  %2895 = vmatprep.subr.mxu0 %v3206_v12  ;;  %s3207_s29 = smov 104   ;;  %vm3209_vm2 = vmmov 0   ;;  %s3210_s23 = smov 112  }
  0x55   : > { %v3010_v8 = vpack.c.bf16 %v701_v6, %v700_v4  ;;  %2897 = vmatprep.mubr.msk.f32.mxu0 %vm3209_vm2, %v3206_v12  ;;  %s3211_s25 = smov 96   ;;  %vm807_vm3 = vcmask 64512   ;;  %s3212_s28 = smov 64   ;;  %vm2144_vm4 = vcmask 130048   ;;  %vm2147_vm5 = vcmask 195584  }
  0x56   : > { %3007 = vmatprep.subr.bf16.mxu1 %v3006_v5  ;;  %s3213_s1 = smov 8   ;;  %s3214_s17 = smov 16   ;;  %vm2398_vm6 = vcmask 523264  }
  0x57   : > { %3009 = vmatpush3.bf16.msra.mxu1 %v3006_v5  ;;  %s3215_s20 = smov 24   ;;  %s3752_s13 = scalar_lea.vmem %s3712_s5, %s3389_s18 }
  0x58   : > { %v3452_v7 = vld [vmem:[#allocation2] sm:$0xff]  ;;  %3011 = vmatprep.subr.bf16.mxu1 %v3010_v8  ;;  %s3753_s14 = scalar_lea.vmem %s3713_s6, %s3389_s18 }
  0x59   : > { %2882 = vmatprep.mubr.msk.f32.mxu1 %vm709_vm1, %v3452_v7  ;;  %v3456_v9 = vld [vmem:[#allocation2 + $0x8] sm:$0xff] }
  0x5b   : > { %3013 = vmatpush3.bf16.msra.mxu1 %v3010_v8 }
  0x5c   : > { %2885 = vmatprep.subr.mxu1 %v3206_v12 }
  0x5e   : > { %2883 = vmatmul.mubr.msk.f32.vlgmr.msra.gmra.mrb[0].mxu1 %vm709_vm1, %v3456_v9 }
  0x5f   : > { %2887 = vmatprep.mubr.msk.f32.mxu1 %vm3209_vm2, %v3206_v12 }
 0x131   : > { %v2884_v11 = vpop.f32.mrb[0].mxu1 }
 0x132   : > { %v782_v13 = vpop.f32.mrb[1].mxu1  ;;  %v3475_v15 = vadd.f32 %v2884_v11, %v2765_v10 }
 0x133   : > { %v3467_v14 = vadd.f32 %v2765_v10, %v782_v13 }
 0x135   : > { %801 = vrot.lane.b32.xlu1 %v3467_v14, %s3207_s29  ;;  %793 = vrot.lane.b32.xlu0 %v3467_v14, %s3208_s21 }
 0x139   : > { %795 = vrot.lane.b32.xlu1 %v3475_v15, %s3208_s21  ;;  %797 = vrot.lane.b32.xlu0 %v3467_v14, %s3210_s23 }
 0x13d   : > { %803 = vrot.lane.b32.xlu1 %v3475_v15, %s3207_s29  ;;  %799 = vrot.lane.b32.xlu0 %v3475_v15, %s3210_s23  ;;  %s3754_s23 = scalar_lea.vmem %s3715_s8, %s3389_s18 }
 0x141   : > { %805 = vrot.lane.b32.xlu0 %v3467_v14, %s3211_s25 }
 0x1a7   : > { %v3482_v16 = vpop.permute.xlu1 %801  ;;  %v3484_v17 = vpop.permute.xlu0 %793 }
 0x1a8   : > { %882 = vrot.lane.b32.xlu1 %v3484_v17, %s3211_s25 }
 0x1ab   : > { %v3487_v18 = vpop.permute.xlu0 %797  ;;  %v3491_v19 = vpop.permute.xlu1 %795 }
 0x1ac   : > { %1034 = vrot.lane.b32.xlu1 %v3482_v16, %s3211_s25  ;;  %958 = vrot.lane.b32.xlu0 %v3487_v18, %s3211_s25 }
 0x1af   : > { %v3493_v20 = vpop.permute.xlu0 %799  ;;  %v3497_v21 = vpop.permute.xlu1 %803 }
 0x1b0   : > { %1186 = vrot.lane.b32.xlu1 %v3491_v19, %s3211_s25  ;;  %1110 = vrot.lane.b32.xlu0 %v3475_v15, %s3211_s25 }
 0x1b3   : > { %v806_v22 = vpop.permute.xlu0 %805 }
 0x1b4   : > { %1338 = vrot.lane.b32.xlu1 %v3497_v21, %s3211_s25  ;;  %1262 = vrot.lane.b32.xlu0 %v3493_v20, %s3211_s25 }
 0x1b5   : > { %2886 = vmatpush3.xpose.msk.msra.mxu1 %vm807_vm3, %v806_v22 }
 0x1b6   : > { %2890 = vmatprep.subr.mxu1 %v3206_v12 }
 0x1b8   : > { %2888 = vmatmul.mubr.msk.f32.vlgmr.msra.gmra.mrb[2].mxu1 %vm807_vm3, %v3467_v14 }
 0x1b9   : > { %2892 = vmatprep.mubr.msk.f32.mxu1 %vm3209_vm2, %v3206_v12 }
 0x21a   : > { %v883_v23 = vpop.permute.xlu1 %882 }
 0x21b   : > { %2891 = vmatpush3.xpose.msk.msra.mxu1 %vm807_vm3, %v883_v23 }
 0x21c   : > { %2900 = vmatprep.subr.mxu1 %v3206_v12 }
 0x21e   : > { %v1035_v24 = vpop.permute.xlu1 %1034  ;;  %2893 = vmatmul.mubr.msk.f32.vlgmr.msra.gmra.mrb[4].mxu1 %vm807_vm3, %v3484_v17  ;;  %v959_v25 = vpop.permute.xlu0 %958 }
 0x21f   : > { %2896 = vmatpush3.xpose.msk.msra.mxu0 %vm807_vm3, %v959_v25  ;;  %2901 = vmatpush3.xpose.msk.msra.mxu1 %vm807_vm3, %v1035_v24 }
 0x220   : > { %2902 = vmatprep.mubr.msk.f32.mxu1 %vm3209_vm2, %v3206_v12  ;;  %2905 = vmatprep.subr.mxu0 %v3206_v12 }
 0x221   : > { %2910 = vmatprep.subr.mxu1 %v3206_v12 }
 0x222   : > { %v1187_v26 = vpop.permute.xlu1 %1186  ;;  %2898 = vmatmul.mubr.msk.f32.vlgmr.msra.gmra.mrb[0].mxu0 %vm807_vm3, %v3487_v18  ;;  %2903 = vmatmul.mubr.msk.f32.vlgmr.msra.gmra.mrb[6].mxu1 %vm807_vm3, %v3482_v16  ;;  %v1111_v27 = vpop.permute.xlu0 %1110 }
 0x223   : > { %2906 = vmatpush3.xpose.msk.msra.mxu0 %vm807_vm3, %v1111_v27  ;;  %2911 = vmatpush3.xpose.msk.msra.mxu1 %vm807_vm3, %v1187_v26 }
 0x224   : > { %2907 = vmatprep.mubr.msk.f32.mxu0 %vm3209_vm2, %v3206_v12  ;;  %2912 = vmatprep.mubr.msk.f32.mxu1 %vm3209_vm2, %v3206_v12 }
 0x225   : > { %2915 = vmatprep.subr.mxu0 %v3206_v12  ;;  %2920 = vmatprep.subr.mxu1 %v3206_v12 }
 0x226   : > { %v1339_v28 = vpop.permute.xlu1 %1338  ;;  %2908 = vmatmul.mubr.msk.f32.vlgmr.msra.gmra.mrb[2].mxu0 %vm807_vm3, %v3475_v15  ;;  %2913 = vmatmul.mubr.msk.f32.vlgmr.msra.gmra.mrb[8].mxu1 %vm807_vm3, %v3491_v19  ;;  %v1263_v29 = vpop.permute.xlu0 %1262 }
 0x227   : > { %2916 = vmatpush3.xpose.msk.msra.mxu0 %vm807_vm3, %v1263_v29  ;;  %2921 = vmatpush3.xpose.msk.msra.mxu1 %vm807_vm3, %v1339_v28 }
 0x228   : > { %2917 = vmatprep.mubr.msk.f32.mxu0 %vm3209_vm2, %v3206_v12  ;;  %2922 = vmatprep.mubr.msk.f32.mxu1 %vm3209_vm2, %v3206_v12 }
 0x229   : > { %2925 = vmatprep.subr.mxu0 %v3206_v12  ;;  %2930 = vmatprep.subr.mxu1 %v3206_v12 }
 0x22a   : > { %2918 = vmatmul.mubr.msk.f32.vlgmr.msra.gmra.mrb[4].mxu0 %vm807_vm3, %v3493_v20  ;;  %2923 = vmatmul.mubr.msk.f32.vlgmr.msra.gmra.mrb[10].mxu1 %vm807_vm3, %v3497_v21 }
 0x22b   : > { %2927 = vmatprep.mubr.msk.f32.mxu0 %vm3209_vm2, %v3206_v12  ;;  %2932 = vmatprep.mubr.msk.f32.mxu1 %vm3209_vm2, %v3206_v12 }
 0x28b   : > { %v878_v30 = vpop.f32.mrb[2].mxu1 }
 0x28c   : > { %v1414_v31 = vmul.f32 0.35355338, %v878_v30  ;;  %v2889_v32 = vpop.f32.mrb[3].mxu1 }
 0x28e   : > { %v1422_v33 = vsel %vm807_vm3, %v1414_v31, -inf }
 0x28f   : > { %1423 = vmax.xlane.f32.xlu0 %v1422_v33 }
 0x2f1   : > { %v954_v34 = vpop.f32.mrb[4].mxu1 }
 0x2f2   : > { %v1415_v35 = vmul.f32 0.35355338, %v954_v34  ;;  %v2894_v36 = vpop.f32.mrb[5].mxu1 }
 0x2f4   : > { %v1425_v37 = vsel %vm807_vm3, %v1415_v35, -inf }
 0x2f5   : > { %1426 = vmax.xlane.f32.xlu1 %v1425_v37  ;;  %v1030_v38 = vpop.f32.mrb[0].mxu0  ;;  %v1106_v39 = vpop.f32.mrb[6].mxu1 }
 0x2f6   : > { %v1416_v40 = vmul.f32 0.35355338, %v1030_v38  ;;  %v2899_v41 = vpop.f32.mrb[1].mxu0  ;;  %v2904_v42 = vpop.f32.mrb[7].mxu1  ;;  %v1417_v43 = vmul.f32 0.35355338, %v1106_v39 }
 0x2f8   : > { %v1428_v44 = vsel %vm807_vm3, %v1416_v40, -inf  ;;  %v1431_v51 = vsel %vm807_vm3, %v1417_v43, -inf }
 0x2f9   : > { %v1258_v45 = vpop.f32.mrb[8].mxu1  ;;  %1429 = vmax.xlane.f32.xlu0 %v1428_v44  ;;  %v1182_v46 = vpop.f32.mrb[2].mxu0 }
 0x2fa   : > { %v1418_v47 = vmul.f32 0.35355338, %v1182_v46  ;;  %v2909_v48 = vpop.f32.mrb[3].mxu0  ;;  %v2914_v49 = vpop.f32.mrb[9].mxu1  ;;  %v1419_v50 = vmul.f32 0.35355338, %v1258_v45 }
 0x2fc   : > { %v1434_v52 = vsel %vm807_vm3, %v1418_v47, -inf  ;;  %v1437_v59 = vsel %vm807_vm3, %v1419_v50, -inf }
 0x2fd   : > { %v1410_v53 = vpop.f32.mrb[10].mxu1  ;;  %1432 = vmax.xlane.f32.xlu0 %v1431_v51  ;;  %1435 = vmax.xlane.f32.xlu1 %v1434_v52  ;;  %v1334_v54 = vpop.f32.mrb[4].mxu0 }
 0x2fe   : > { %v1420_v55 = vmul.f32 0.35355338, %v1334_v54  ;;  %v2919_v56 = vpop.f32.mrb[5].mxu0  ;;  %v2924_v57 = vpop.f32.mrb[11].mxu1  ;;  %v1421_v58 = vmul.f32 0.35355338, %v1410_v53 }
 0x300   : > { %v1440_v60 = vsel %vm807_vm3, %v1420_v55, -inf  ;;  %v1443_v61 = vsel %vm807_vm3, %v1421_v58, -inf }
 0x301   : > { %1438 = vmax.xlane.f32.xlu0 %v1437_v59  ;;  %1441 = vmax.xlane.f32.xlu1 %v1440_v60 }
 0x305   : > { %1444 = vmax.xlane.f32.xlu0 %v1443_v61 }
 0x312   : > { %1510 = vrot.lane.b32.xlu1 %v3467_v14, %s3212_s28 }
 0x316   : > { %1662 = vrot.lane.b32.xlu1 %v3487_v18, %s3212_s28 }
 0x31a   : > { %1738 = vrot.lane.b32.xlu1 %v3482_v16, %s3212_s28 }
 0x31b   : > { %1586 = vrot.lane.b32.xlu0 %v3484_v17, %s3212_s28 }
 0x31c   : > { %v1424_v62 = vpop.xlane.xlu0 %1423 }
 0x31d   : > { %v1446_v63 = vsub.f32 %v1414_v31, %v1424_v62 }
 0x31e   : > { %1890 = vrot.lane.b32.xlu1 %v3491_v19, %s3212_s28 }
 0x31f   : > { %1814 = vrot.lane.b32.xlu0 %v3475_v15, %s3212_s28  ;;  %v1454_v0 = vmul.f32 1.442695, %v1446_v63 }
 0x321   : > { %3095 = vpow2.f32 %v1454_v0 }
 0x32b   : > { %v3569_v1 = vpop.eup %3095 }
 0x32c   : > { %v1470_v2 = vsel %vm807_vm3, %v3569_v1, 0.0 }
 0x342   : > { %1471 = vadd.xlane.f32.xlu1 %v1470_v2 }
 0x382   : > { %v1427_v3 = vpop.xlane.xlu1 %1426 }
 0x383   : > { %v1447_v4 = vsub.f32 %v1415_v35, %v1427_v3 }
 0x385   : > { %v1456_v5 = vmul.f32 1.442695, %v1447_v4 }
 0x386   : > { %v1430_v6 = vpop.xlane.xlu0 %1429 }
 0x387   : > { %3097 = vpow2.f32 %v1456_v5  ;;  %v1448_v8 = vsub.f32 %v1416_v40, %v1430_v6 }
 0x389   : > { %v1458_v10 = vmul.f32 1.442695, %v1448_v8 }
 0x38a   : > { %v1436_v11 = vpop.xlane.xlu1 %1435  ;;  %v1433_v13 = vpop.xlane.xlu0 %1432 }
 0x38b   : > { %3099 = vpow2.f32 %v1458_v10  ;;  %v1450_v14 = vsub.f32 %v1418_v47, %v1436_v11  ;;  %v1449_v15 = vsub.f32 %v1417_v43, %v1433_v13 }
 0x38d   : > { %v1462_v16 = vmul.f32 1.442695, %v1450_v14  ;;  %v1460_v17 = vmul.f32 1.442695, %v1449_v15  ;;  %v2150_v15 = vld [vmem:[%s3402_s26] sm:$0xff] }
 0x38e   : > { %v1442_v18 = vpop.xlane.xlu1 %1441  ;;  %v1439_v19 = vpop.xlane.xlu0 %1438 }
 0x38f   : > { %3101 = vpow2.f32 %v1462_v16  ;;  %v1452_v22 = vsub.f32 %v1420_v55, %v1442_v18  ;;  %v1451_v23 = vsub.f32 %v1419_v50, %v1439_v19  ;;  %v2151_v16 = vld [vmem:[%s3402_s26 + $0x8] sm:$0xff] }
 0x390   : > { %3103 = vpow2.f32 %v1460_v17  ;;  %v3014_v18 = vpack.c.bf16 %v2151_v16, %v2150_v15 }
 0x391   : > { %v3098_v24 = vpop.eup %3097  ;;  %v1466_v25 = vmul.f32 1.442695, %v1452_v22  ;;  %v1464_v26 = vmul.f32 1.442695, %v1451_v23  ;;  %v2152_v22 = vld [vmem:[%s3402_s26 + $0x10] sm:$0xff]  ;;  %v2153_v23 = vld [vmem:[%s3402_s26 + $0x18] sm:$0xff] }
 0x392   : > { %v1511_v27 = vpop.permute.xlu1 %1510  ;;  %v1445_v28 = vpop.xlane.xlu0 %1444  ;;  %v1473_v29 = vsel %vm807_vm3, %v3098_v24, 0.0  ;;  %s3751_s26 = sld [smem:[#allocation10_spill]] }
 0x393   : > { %3105 = vpow2.f32 %v1466_v25  ;;  %v1453_v30 = vsub.f32 %v1421_v58, %v1445_v28  ;;  %1474 = vadd.xlane.f32.xlu0 %v1473_v29  ;;  %2926 = vmatpush3.msra.mxu0 %v1511_v27 }
 0x394   : > { %3107 = vpow2.f32 %v1464_v26  ;;  %2935 = vmatprep.subr.mxu0 %v3206_v12 }
 0x395   : > { %v3100_v31 = vpop.eup %3099  ;;  %v1468_v32 = vmul.f32 1.442695, %v1453_v30 }
 0x396   : > { %v1587_v33 = vpop.permute.xlu0 %1586  ;;  %v1476_v34 = vsel %vm807_vm3, %v3100_v31, 0.0  ;;  %v1663_v45 = vpop.permute.xlu1 %1662 }
 0x397   : > { %3109 = vpow2.f32 %v1468_v32  ;;  %1477 = vadd.xlane.f32.xlu1 %v1476_v34  ;;  %2931 = vmatpush3.msra.mxu1 %v1587_v33 }
 0x398   : > { %2940 = vmatprep.subr.mxu1 %v3206_v12 }
 0x399   : > { %v3102_v35 = vpop.eup %3101 }
 0x39a   : > { %v3104_v36 = vpop.eup %3103  ;;  %v1482_v37 = vsel %vm807_vm3, %v3102_v35, 0.0  ;;  %v1739_v46 = vpop.permute.xlu1 %1738 }
 0x39b   : > { %1483 = vadd.xlane.f32.xlu1 %v1482_v37  ;;  %v1479_v38 = vsel %vm807_vm3, %v3104_v36, 0.0 }
 0x39c   : > { %1480 = vadd.xlane.f32.xlu0 %v1479_v38 }
 0x39d   : > { %v3106_v39 = vpop.eup %3105 }
 0x39e   : > { %v3108_v40 = vpop.eup %3107  ;;  %v1488_v41 = vsel %vm807_vm3, %v3106_v39, 0.0  ;;  %v1891_v47 = vpop.permute.xlu1 %1890 }
 0x39f   : > { %1489 = vadd.xlane.f32.xlu1 %v1488_v41  ;;  %v1485_v42 = vsel %vm807_vm3, %v3108_v40, 0.0 }
 0x3a0   : > { %1486 = vadd.xlane.f32.xlu0 %v1485_v42 }
 0x3a1   : > { %v3581_v43 = vpop.eup %3109 }
 0x3a2   : > { %v1491_v44 = vsel %vm807_vm3, %v3581_v43, 0.0 }
 0x3a4   : > { %1492 = vadd.xlane.f32.xlu0 %v1491_v44 }
 0x3b0   : > { %2042 = vrot.lane.b32.xlu1 %v3497_v21, %s3212_s28  ;;  %v1815_v21 = vpop.permute.xlu0 %1814 }
 0x3ba   : > { %1966 = vrot.lane.b32.xlu0 %v3493_v20, %s3212_s28 }
 0x3cf   : > { %v1472_v48 = vpop.xlane.xlu1 %1471 }
 0x3d0   : > { %3111 = vrcp.f32 %v1472_v48 }
 0x3da   : > { %v3112_v49 = vpop.eup %3111 }
 0x3db   : > { %v1502_v50 = vmul.f32 %v3112_v49, %v3569_v1 }
 0x3dd   : > { %2928 = vmatmul.mubr.msk.f32.vlgmr.msra.gmra.mrb[6].mxu0 %vm807_vm3, %v1502_v50 }
 0x3de   : > { %2936 = vmatpush3.msra.mxu0 %v1663_v45  ;;  %2937 = vmatprep.mubr.msk.f32.mxu0 %vm3209_vm2, %v3206_v12 }
 0x3df   : > { %2945 = vmatprep.subr.mxu0 %v3206_v12 }
 0x420   : > { %v1475_v51 = vpop.xlane.xlu0 %1474 }
 0x421   : > { %3113 = vrcp.f32 %v1475_v51 }
 0x424   : > { %v1478_v20 = vpop.xlane.xlu1 %1477 }
 0x425   : > { %3115 = vrcp.f32 %v1478_v20 }
 0x428   : > { %v1484_v52 = vpop.xlane.xlu1 %1483 }
 0x429   : > { %3117 = vrcp.f32 %v1484_v52  ;;  %v1481_v53 = vpop.xlane.xlu0 %1480 }
 0x42a   : > { %3119 = vrcp.f32 %v1481_v53 }
 0x42b   : > { %v3114_v54 = vpop.eup %3113 }
 0x42c   : > { %v1503_v55 = vmul.f32 %v3114_v54, %v3098_v24  ;;  %v1490_v56 = vpop.xlane.xlu1 %1489  ;;  %v3018_v24 = vpack.c.bf16 %v2153_v23, %v2152_v22 }
 0x42d   : > { %3121 = vrcp.f32 %v1490_v56  ;;  %v1487_v57 = vpop.xlane.xlu0 %1486 }
 0x42e   : > { %3123 = vrcp.f32 %v1487_v57  ;;  %2933 = vmatmul.mubr.msk.f32.vlgmr.msra.gmra.mrb[12].mxu1 %vm807_vm3, %v1503_v55 }
 0x42f   : > { %v3116_v58 = vpop.eup %3115  ;;  %2941 = vmatpush3.msra.mxu1 %v1739_v46  ;;  %2942 = vmatprep.mubr.msk.f32.mxu1 %vm3209_vm2, %v3206_v12 }
 0x430   : > { %v1504_v59 = vmul.f32 %v3116_v58, %v3100_v31  ;;  %2950 = vmatprep.subr.mxu1 %v3206_v12  ;;  %v2043_v6 = vpop.permute.xlu1 %2042 }
 0x431   : > { %v1493_v60 = vpop.xlane.xlu0 %1492 }
 0x432   : > { %3125 = vrcp.f32 %v1493_v60  ;;  %2938 = vmatmul.mubr.msk.f32.vlgmr.msra.gmra.mrb[8].mxu0 %vm807_vm3, %v1504_v59 }
 0x433   : > { %v3118_v61 = vpop.eup %3117  ;;  %2946 = vmatpush3.msra.mxu0 %v1815_v21  ;;  %2947 = vmatprep.mubr.msk.f32.mxu0 %vm3209_vm2, %v3206_v12 }
 0x434   : > { %v3120_v62 = vpop.eup %3119  ;;  %v1506_v63 = vmul.f32 %v3118_v61, %v3102_v35  ;;  %2955 = vmatprep.subr.mxu0 %v3206_v12 }
 0x435   : > { %v1505_v0 = vmul.f32 %v3120_v62, %v3104_v36  ;;  %v1967_v1 = vpop.permute.xlu0 %1966  ;;  %v2289_v62 = vld [vmem:[%s3415_s16] sm:$0xff] }
 0x436   : > { %2948 = vmatmul.mubr.msk.f32.vlgmr.msra.gmra.mrb[10].mxu0 %vm807_vm3, %v1506_v63  ;;  %v2290_v63 = vld [vmem:[%s3415_s16 + $0x8] sm:$0xff] }
 0x437   : > { %v3122_v2 = vpop.eup %3121  ;;  %2943 = vmatmul.mubr.msk.f32.vlgmr.msra.gmra.mrb[14].mxu1 %vm807_vm3, %v1505_v0  ;;  %2956 = vmatpush3.msra.mxu0 %v1967_v1  ;;  %v3022_v0 = vpack.c.bf16 %v2290_v63, %v2289_v62  ;;  %v2291_v1 = vld [vmem:[%s3415_s16 + $0x10] sm:$0xff] }
 0x438   : > { %v3124_v3 = vpop.eup %3123  ;;  %v1508_v4 = vmul.f32 %v3122_v2, %v3106_v39  ;;  %2951 = vmatpush3.msra.mxu1 %v1891_v47  ;;  %2952 = vmatprep.mubr.msk.f32.mxu1 %vm3209_vm2, %v3206_v12  ;;  %v2792_v47 = vld [vmem:[%s3751_s26] ss:$0 sm:$0xff]  ;;  %v2292_v2 = vld [vmem:[%s3415_s16 + $0x18] sm:$0xff]  ;;  %s3756_s16 = sld [smem:[#allocation17_spill]] }
 0x439   : > { %v1507_v5 = vmul.f32 %v3124_v3, %v3108_v40  ;;  %2957 = vmatprep.mubr.msk.f32.mxu0 %vm3209_vm2, %v3206_v12  ;;  %2960 = vmatprep.subr.mxu1 %v3206_v12  ;;  %v3026_v3 = vpack.c.bf16 %v2292_v2, %v2291_v1  ;;  %v2803_v1 = vld [vmem:[%s678_s0] ss:$0 sm:$0xff]  ;;  %s3755_s0 = sld [smem:[#allocation16_spill]] }
 0x43a   : > { %2958 = vmatmul.mubr.msk.f32.vlgmr.msra.gmra.mrb[12].mxu0 %vm807_vm3, %v1508_v4  ;;  %3015 = vmatprep.subr.bf16.mxu0 %v3014_v18  ;;  %v2383_v4 = vld [vmem:[%s3429_s19] sm:$0xff] }
 0x43b   : > { %2953 = vmatmul.mubr.msk.f32.vlgmr.msra.gmra.mrb[16].mxu1 %vm807_vm3, %v1507_v5  ;;  %3017 = vmatpush3.bf16.msra.mxu0 %v3014_v18  ;;  %v2384_v5 = vld [vmem:[%s3429_s19 + $0x8] sm:$0xff] }
 0x43c   : > { %v3126_v8 = vpop.eup %3125  ;;  %2961 = vmatpush3.msra.mxu1 %v2043_v6  ;;  %2962 = vmatprep.mubr.msk.f32.mxu1 %vm3209_vm2, %v3206_v12  ;;  %v2385_v6 = vld [vmem:[%s3429_s19 + $0x10] sm:$0xff] }
 0x43d   : > { %v1509_v10 = vmul.f32 %v3126_v8, %v3581_v43  ;;  %3019 = vmatprep.subr.bf16.mxu0 %v3018_v24  ;;  %3023 = vmatprep.subr.bf16.mxu1 %v3022_v0  ;;  %v3030_v8 = vpack.c.bf16 %v2384_v5, %v2383_v4  ;;  %v2804_v4 = vld [vmem:[%s681_s24] ss:$0 sm:$0xff] }
 0x43f   : > { %2963 = vmatmul.mubr.msk.f32.vlgmr.msra.gmra.mrb[18].mxu1 %vm807_vm3, %v1509_v10  ;;  %3021 = vmatpush3.bf16.msra.mxu0 %v3018_v24  ;;  %v2386_v10 = vld [vmem:[%s3429_s19 + $0x18] sm:$0xff]  ;;  %v2795_v24 = vld [vmem:[%s3752_s13] ss:$0 sm:$0xff] }
 0x440   : > { %3025 = vmatpush3.bf16.msra.mxu1 %v3022_v0  ;;  %3031 = vmatprep.subr.bf16.mxu0 %v3030_v8 }
 0x441   : > { %3027 = vmatprep.subr.bf16.mxu1 %v3026_v3 }
 0x444   : > { %3029 = vmatpush3.bf16.msra.mxu1 %v3026_v3 }
 0x4b0   : > { %v1582_v11 = vpop.f32.mrb[6].mxu0 }
 0x4b1   : > { %v2929_v13 = vpop.f32.mrb[7].mxu0 }
 0x4b2   : > { %v2387_v13 = vld [vmem:[%s3429_s19 + $0x20] sm:$0xff] }
 0x501   : > { %v1658_v14 = vpop.f32.mrb[12].mxu1 }
 0x502   : > { %2120 = vrot.lane.b32.xlu0 %v1658_v14, %s3213_s1  ;;  %v2934_v17 = vpop.f32.mrb[13].mxu1  ;;  %v2388_v14 = vld [vmem:[%s3429_s19 + $0x28] sm:$0xff] }
 0x503   : > { %v3038_v15 = vpack.c.bf16 %v2388_v14, %v2387_v13 }
 0x505   : > { %v1734_v19 = vpop.f32.mrb[8].mxu0 }
 0x506   : > { %v2939_v12 = vpop.f32.mrb[9].mxu0  ;;  %2128 = vrot.lane.b32.xlu0 %v1734_v19, %s3214_s17 }
 0x509   : > { %v1886_v25 = vpop.f32.mrb[10].mxu0 }
 0x50a   : > { %v1810_v26 = vpop.f32.mrb[14].mxu1  ;;  %v2949_v27 = vpop.f32.mrb[11].mxu0 }
 0x50b   : > { %2136 = vrot.lane.b32.xlu0 %v1810_v26, %s3215_s20  ;;  %v2944_v28 = vpop.f32.mrb[15].mxu1  ;;  %v2796_v26 = vld [vmem:[%s3753_s14] ss:$0 sm:$0xff] }
 0x50d   : > { %v2038_v29 = vpop.f32.mrb[12].mxu0 }
 0x50e   : > { %v1962_v30 = vpop.f32.mrb[16].mxu1  ;;  %v2959_v31 = vpop.f32.mrb[13].mxu0 }
 0x50f   : > { %2122 = vrot.lane.b32.xlu1 %v1962_v30, %s3213_s1  ;;  %v2954_v32 = vpop.f32.mrb[17].mxu1 }
 0x512   : > { %v2114_v33 = vpop.f32.mrb[18].mxu1 }
 0x513   : > { %v2964_v34 = vpop.f32.mrb[19].mxu1  ;;  %2130 = vrot.lane.b32.xlu1 %v2038_v29, %s3214_s17 }
 0x514   : > { %v2390_v34 = vld [vmem:[%s3429_s19 + $0x38] sm:$0xff] }
 0x517   : > { %2138 = vrot.lane.b32.xlu1 %v2114_v33, %s3215_s20  ;;  %v2389_v33 = vld [vmem:[%s3429_s19 + $0x30] sm:$0xff] }
 0x574   : > { %v2121_v35 = vpop.permute.xlu0 %2120 }
 0x575   : > { %v2142_v37 = vsel %vm807_vm3, %v1582_v11, %v2121_v35  ;;  %v3034_v11 = vpack.c.bf16 %v2386_v10, %v2385_v6  ;;  %v3042_v35 = vpack.c.bf16 %v2390_v34, %v2389_v33  ;;  %v2805_v33 = vld [vmem:[%s3755_s0] ss:$0 sm:$0xff] }
 0x578   : > { %v2129_v36 = vpop.permute.xlu0 %2128 }
 0x579   : > { %v2145_v38 = vsel %vm2144_vm4, %v2142_v37, %v2129_v36  ;;  %v2797_v36 = vld [vmem:[%s3754_s23] ss:$0 sm:$0xff] }
 0x57d   : > { %v2137_v39 = vpop.permute.xlu0 %2136 }
 0x57e   : > { %v2148_v40 = vsel %vm2147_vm5, %v2145_v38, %v2137_v39 }
 0x57f   : > { %2973 = vmatprep.mubr.msk.f32.mxu0 %vm709_vm1, %v2148_v40 }
 0x581   : > { %v2123_v41 = vpop.permute.xlu1 %2122 }
 0x582   : > { %v2143_v43 = vsel %vm807_vm3, %v1886_v25, %v2123_v41 }
 0x585   : > { %v2131_v42 = vpop.permute.xlu1 %2130 }
 0x586   : > { %v2146_v44 = vsel %vm2144_vm4, %v2143_v43, %v2131_v42  ;;  %v2800_v43 = vld [vmem:[%s675_s3] ss:$0 sm:$0xff] }
 0x589   : > { %v2139_v45 = vpop.permute.xlu1 %2138 }
 0x58a   : > { %v2149_v46 = vsel %vm2147_vm5, %v2146_v44, %v2139_v45 }
 0x58b   : > { %2974 = vmatmul.mubr.msk.f32.vlgmr.msra.gmra.mrb[14].mxu0 %vm709_vm1, %v2149_v46 }
 0x58c   : > { %3033 = vmatpush3.bf16.msra.mxu0 %v3030_v8 }
 0x58d   : > { %3035 = vmatprep.subr.bf16.mxu0 %v3034_v11 }
 0x590   : > { %3037 = vmatpush3.bf16.msra.mxu0 %v3034_v11 }
 0x591   : > { %3039 = vmatprep.subr.bf16.mxu0 %v3038_v15 }
 0x594   : > { %3041 = vmatpush3.bf16.msra.mxu0 %v3038_v15 }
 0x595   : > { %3043 = vmatprep.subr.bf16.mxu0 %v3042_v35 }
 0x598   : > { %3045 = vmatpush3.bf16.msra.mxu0 %v3042_v35 }
 0x65e   : > { %v2975_v48 = vpop.f32.mrb[14].mxu0 }
 0x65f   : > { %v2239_v49 = vadd.f32 %v2975_v48, %v2792_v47  ;;  %v2233_v50 = vpop.f32.mrb[15].mxu0 }
 0x660   : > { %v2234_v21 = vadd.f32 %v2792_v47, %v2233_v50 }
 0x661   : > { %v2243_v51 = vadd.f32 %v2239_v49, %v3456_v9 }
 0x662   : > { %v2242_v20 = vadd.f32 %v2234_v21, %v3452_v7 }
 0x663   : > { %v2249_v52 = vsel %vm709_vm1, %v2243_v51, 0.0 }
 0x664   : > { %2250 = vadd.xlane.f32.xlu1 %v2249_v52  ;;  %v2246_v53 = vsel %vm709_vm1, %v2242_v20, 0.0 }
 0x665   : > { %2247 = vadd.xlane.f32.xlu0 %v2246_v53 }
 0x6f1   : > { %v2251_v54 = vpop.xlane.xlu1 %2250 }
 0x6f2   : > { %v2254_v55 = vmul.f32 0.03125, %v2251_v54  ;;  %v2248_v56 = vpop.xlane.xlu0 %2247 }
 0x6f3   : > { %v2253_v57 = vmul.f32 0.03125, %v2248_v56 }
 0x6f4   : > { %v2256_v58 = vsub.f32 %v2243_v51, %v2254_v55 }
 0x6f5   : > { %v2255_v59 = vsub.f32 %v2242_v20, %v2253_v57 }
 0x6f6   : > { %v2258_v9 = vmul.f32 %v2256_v58, %v2256_v58 }
 0x6f7   : > { %v2257_v60 = vmul.f32 %v2255_v59, %v2255_v59 }
 0x6f8   : > { %v2262_v61 = vsel %vm709_vm1, %v2258_v9, 0.0 }
 0x6f9   : > { %v2259_v7 = vsel %vm709_vm1, %v2257_v60, 0.0 }
 0x6fa   : > { %2260 = vadd.xlane.f32.xlu0 %v2259_v7 }
 0x6fe   : > { %2263 = vadd.xlane.f32.xlu0 %v2262_v61 }
 0x787   : > { %v2261_v16 = vpop.xlane.xlu0 %2260 }
 0x788   : > { %v2265_v17 = vmul.f32 0.03125, %v2261_v16 }
 0x78a   : > { %v2267_v18 = vadd.f32 1e-05, %v2265_v17 }
 0x78b   : > { %v2264_v19 = vpop.xlane.xlu0 %2263 }
 0x78c   : > { %3127 = vrsqrt.f32 %v2267_v18  ;;  %v2266_v22 = vmul.f32 0.03125, %v2264_v19 }
 0x78e   : > { %v2268_v23 = vadd.f32 1e-05, %v2266_v22 }
 0x790   : > { %3129 = vrsqrt.f32 %v2268_v23 }
 0x796   : > { %v3128_v12 = vpop.eup %3127 }
 0x797   : > { %v2271_v25 = vmul.f32 %v3128_v12, %v2255_v59 }
 0x799   : > { %v2279_v27 = vmul.f32 %v2795_v24, %v2271_v25 }
 0x79a   : > { %v3130_v28 = vpop.eup %3129 }
 0x79b   : > { %v2272_v29 = vmul.f32 %v3130_v28, %v2256_v58  ;;  %v2287_v30 = vadd.f32 %v2796_v26, %v2279_v27 }
 0x79d   : > { %v2280_v31 = vmul.f32 %v2795_v24, %v2272_v29  ;;  %2984 = vmatprep.mubr.msk.f32.mxu1 %vm709_vm1, %v2287_v30 }
 0x79f   : > { %v2288_v32 = vadd.f32 %v2796_v26, %v2280_v31 }
 0x7a1   : > { %2985 = vmatmul.mubr.msk.f32.vlgmr.msra.gmra.mrb[20].mxu1 %vm709_vm1, %v2288_v32 }
 0x874   : > { %v2986_v37 = vpop.f32.mrb[20].mxu1 }
 0x875   : > { %v2378_v38 = vadd.f32 %v2986_v37, %v2797_v36  ;;  %v2372_v39 = vpop.f32.mrb[21].mxu1 }
 0x876   : > { %v2373_v40 = vadd.f32 %v2797_v36, %v2372_v39  ;;  %v2806_v36 = vld [vmem:[%s3756_s16] ss:$0 sm:$0xff] }
 0x877   : > { %v2382_v42 = vmax.f32 %v2378_v38, 0.0 }
 0x878   : > { %v2381_v41 = vmax.f32 %v2373_v40, 0.0 }
 0x87a   : > { %3003 = vmatprep.mubr.msk.f32.mxu0 %vm2398_vm6, %v2381_v41 }
 0x87b   : > { %3004 = vmatmul.mubr.msk.f32.vlgmr.msra.gmra.mrb[16].mxu0 %vm2398_vm6, %v2382_v42 }
 0x94e   : > { %v3005_v44 = vpop.f32.mrb[16].mxu0 }
 0x94f   : > { %v2477_v45 = vadd.f32 %v3005_v44, %v2800_v43  ;;  %v2471_v46 = vpop.f32.mrb[17].mxu0 }
 0x950   : > { %v2472_v47 = vadd.f32 %v2800_v43, %v2471_v46 }
 0x951   : > { %v2481_v48 = vadd.f32 %v2477_v45, %v2288_v32 }
 0x952   : > { %v2480_v49 = vadd.f32 %v2472_v47, %v2287_v30 }
 0x953   : > { %v2487_v50 = vsel %vm709_vm1, %v2481_v48, 0.0 }
 0x954   : > { %2488 = vadd.xlane.f32.xlu0 %v2487_v50  ;;  %v2484_v21 = vsel %vm709_vm1, %v2480_v49, 0.0 }
 0x955   : > { %2485 = vadd.xlane.f32.xlu1 %v2484_v21 }
 0x9e1   : > { %v2489_v51 = vpop.xlane.xlu0 %2488 }
 0x9e2   : > { %v2491_v20 = vmul.f32 0.03125, %v2489_v51  ;;  %v2486_v52 = vpop.xlane.xlu1 %2485 }
 0x9e3   : > { %v2490_v53 = vmul.f32 0.03125, %v2486_v52 }
 0x9e4   : > { %v2493_v54 = vsub.f32 %v2481_v48, %v2491_v20 }
 0x9e5   : > { %v2492_v55 = vsub.f32 %v2480_v49, %v2490_v53 }
 0x9e6   : > { %v2495_v56 = vmul.f32 %v2493_v54, %v2493_v54 }
 0x9e7   : > { %v2494_v57 = vmul.f32 %v2492_v55, %v2492_v55 }
 0x9e8   : > { %v2499_v58 = vsel %vm709_vm1, %v2495_v56, 0.0 }
 0x9e9   : > { %2500 = vadd.xlane.f32.xlu0 %v2499_v58  ;;  %v2496_v59 = vsel %vm709_vm1, %v2494_v57, 0.0 }
 0x9ea   : > { %2497 = vadd.xlane.f32.xlu1 %v2496_v59 }
 0xa76   : > { %v2501_v60 = vpop.xlane.xlu0 %2500 }
 0xa77   : > { %v2503_v7 = vmul.f32 0.03125, %v2501_v60  ;;  %v2498_v9 = vpop.xlane.xlu1 %2497 }
 0xa78   : > { %v2502_v61 = vmul.f32 0.03125, %v2498_v9 }
 0xa79   : > { %v2505_v62 = vadd.f32 1e-05, %v2503_v7 }
 0xa7a   : > { %v2504_v63 = vadd.f32 1e-05, %v2502_v61 }
 0xa7b   : > { %3131 = vrsqrt.f32 %v2505_v62 }
 0xa7c   : > { %3133 = vrsqrt.f32 %v2504_v63 }
 0xa85   : > { %v3132_v0 = vpop.eup %3131 }
 0xa86   : > { %v3134_v2 = vpop.eup %3133  ;;  %v2509_v3 = vmul.f32 %v3132_v0, %v2493_v54 }
 0xa87   : > { %v2508_v5 = vmul.f32 %v3134_v2, %v2492_v55 }
 0xa88   : > { %v2517_v6 = vmul.f32 %v2803_v1, %v2509_v3 }
 0xa89   : > { %v2516_v8 = vmul.f32 %v2803_v1, %v2508_v5 }
 0xa8a   : > { %v2525_v10 = vadd.f32 %v2804_v4, %v2517_v6 }
 0xa8b   : > { %v2524_v11 = vadd.f32 %v2804_v4, %v2516_v8 }
 0xa8c   : > { %v2531_v13 = vsel %vm709_vm1, %v2525_v10, 0.0 }
 0xa8d   : > { %2532 = vadd.xlane.f32.xlu0 %v2531_v13  ;;  %v2528_v14 = vsel %vm709_vm1, %v2524_v11, 0.0 }
 0xa8e   : > { %2529 = vadd.xlane.f32.xlu1 %v2528_v14 }
 0xb1a   : > { %v2533_v15 = vpop.xlane.xlu0 %2532 }
 0xb1b   : > { %v2535_v16 = vmul.f32 0.03125, %v2533_v15  ;;  %v2530_v17 = vpop.xlane.xlu1 %2529 }
 0xb1c   : > { %v2534_v18 = vmul.f32 0.03125, %v2530_v17 }
 0xb1d   : > { %v2537_v19 = vsub.f32 %v2525_v10, %v2535_v16 }
 0xb1e   : > { %v2536_v22 = vsub.f32 %v2524_v11, %v2534_v18 }
 0xb1f   : > { %v2539_v23 = vmul.f32 %v2537_v19, %v2537_v19 }
 0xb20   : > { %v2538_v12 = vmul.f32 %v2536_v22, %v2536_v22 }
 0xb21   : > { %v2543_v24 = vsel %vm709_vm1, %v2539_v23, 0.0 }
 0xb22   : > { %2544 = vadd.xlane.f32.xlu0 %v2543_v24  ;;  %v2540_v25 = vsel %vm709_vm1, %v2538_v12, 0.0 }
 0xb23   : > { %2541 = vadd.xlane.f32.xlu1 %v2540_v25 }
 0xbaf   : > { %v2545_v26 = vpop.xlane.xlu0 %2544 }
 0xbb0   : > { %v2547_v27 = vmul.f32 0.03125, %v2545_v26  ;;  %v2542_v28 = vpop.xlane.xlu1 %2541 }
 0xbb1   : > { %v2546_v29 = vmul.f32 0.03125, %v2542_v28 }
 0xbb2   : > { %v2549_v30 = vadd.f32 1e-05, %v2547_v27 }
 0xbb3   : > { %v2548_v31 = vadd.f32 1e-05, %v2546_v29 }
 0xbb4   : > { %3135 = vrsqrt.f32 %v2549_v30 }
 0xbb5   : > { %3137 = vrsqrt.f32 %v2548_v31 }
 0xbbe   : > { %v3136_v32 = vpop.eup %3135 }
 0xbbf   : > { %v3138_v34 = vpop.eup %3137  ;;  %v2553_v35 = vmul.f32 %v3136_v32, %v2537_v19 }
 0xbc0   : > { %v2552_v37 = vmul.f32 %v3138_v34, %v2536_v22 }
 0xbc1   : > { %v2561_v38 = vmul.f32 %v2805_v33, %v2553_v35 }
 0xbc2   : > { %v2560_v39 = vmul.f32 %v2805_v33, %v2552_v37 }
 0xbc3   : > { %v2569_v40 = vadd.f32 %v2806_v36, %v2561_v38 }
 0xbc4   : > { %v2568_v41 = vadd.f32 %v2806_v36, %v2560_v39 }
 0xbc5   : > { %2571 = vst.msk [vmem:[#allocation2 + $0x8] sm:$0xff] %vm709_vm1, %v2569_v40  ;;  %2573 = vst.msk [vmem:[%s3443_s7 + $0x8] sm:$0xff] %vm709_vm1, %v2569_v40 }
 0xbc6   : > { %2570 = vst.msk [vmem:[#allocation2] sm:$0xff] %vm709_vm1, %v2568_v41  ;;  %2572 = vst.msk [vmem:[%s3443_s7] sm:$0xff] %vm709_vm1, %v2568_v41 }
 0xbc7 PF: > { %s3757_s21 = sld [smem:[#allocation8_spill]]  ;;  %s3758_s18 = sld [smem:[#allocation6_spill]] }
 0xbc8   : > { %s3759_s19 = sld [smem:[#allocation7_spill]]  ;;  %s3760_s20 = sld [smem:[#allocation9_spill]] }
 0xbcd   : > { %p25_p8 = scmp.ge.s32.totalorder %s3757_s21, 4  }
 0xbcf   :  { %27 = sbr.rel (!%p25_p8) target bundleno = 11 (0xb), region = 157 }
 0xbd6   :  { %2595 = vsyncpa [#allocation4], 1 }
 0xbd7   :  { %2597 = vsyncpa [#allocation4 + $0x1], 1 }

</bundles_post_ra>
